<compile_context>
chip_gen: v7x
topology: tpu7x:2x2x1
jax: 0.10.0
libtpu: 0.0.40
codegen_flags: <defaults>
</compile_context>

<pallas_src>
import functools

import numpy as np
import jax
import jax.numpy as jnp
from jax import lax
from jax.experimental import pallas as pl
from jax.experimental.pallas import tpu as pltpu


def _round_up(x, m):
    return (x + m - 1) // m * m


# ----------------------------------------------------------------------------
# Fused DBlock Pallas kernel
#
# Activation layout: every image is zero-padded spatially (H+2, W+2), row-major
# flattened, then lane-padded to SP = round_up((H+2)*(W+2), 128); images are
# concatenated along lanes.  For a "real" output lane p, the (kh, kw) conv tap
# lives at lane p + (kh-1)*Wp + (kw-1), always inside the same image segment,
# so a lane rotation (pltpu.roll) of the whole block gives every tap exactly;
# wrap-around only touches halo/pad lanes whose results are discarded.
# ----------------------------------------------------------------------------
def _dblock_kernel(xf_ref, mask_ref, w1_ref, b1_ref, w2_ref, b2_ref,
                   wsc_ref, bsc_ref, o_ref, *, Wp, compute_dtype):
    f32 = jnp.float32
    xf = xf_ref[...]            # (IC, BL)  zero-padded activations
    mask = mask_ref[...]        # (1,  BL)  1.0 on real output lanes, 0.0 on halo/pad
    BL = xf.shape[-1]           # multiple of 128 -> exact vreg-granular rotates

    def shifted(val, delta):
        # shifted[:, p] == val[:, p + delta]  (wrap only touches discarded lanes)
        if delta == 0:
            return val
        return pltpu.roll(val, shift=(-delta) % BL, axis=1)

    def conv3x3(val, w_ref):
        # 9 accumulated (OC, C) @ (C, BL) matmuls, one per tap (K = C per tap).
        acc = None
        for kh in range(3):
            for kw in range(3):
                t = kh * 3 + kw
                delta = (kh - 1) * Wp + (kw - 1)
                lhs = w_ref[t].astype(compute_dtype)              # (OC, C)
                rhs = shifted(val, delta).astype(compute_dtype)   # (C, BL)
                part = lax.dot_general(lhs, rhs, (((1,), (0,)), ((), ())),
                                       preferred_element_type=f32)
                acc = part if acc is None else acc + part
        return acc

    # conv1 (3x3, pad=1) + bias + ReLU; mask re-zeroes halo/pad lanes so h is a
    # valid zero-padded input for conv2.  h stays entirely on-chip.
    h = jnp.maximum(conv3x3(xf, w1_ref) + b1_ref[...], 0.0) * mask

    # conv2 (3x3, pad=1) + bias
    out = conv3x3(h, w2_ref) + b2_ref[...]

    # shortcut: learnable 1x1 conv on x, fused with the residual add (epilogue)
    sc = lax.dot_general(wsc_ref[...].astype(compute_dtype),
                         xf.astype(compute_dtype),
                         (((1,), (0,)), ((), ())),
                         preferred_element_type=f32) + bsc_ref[...]

    o_ref[...] = (out + sc).astype(o_ref.dtype)


# ----------------------------------------------------------------------------
# Plain-JAX glue: spectral norm (tiny 1xC vectors) — mirrors PyTorch power_iteration
# with torch.no_grad() on the u/v updates (eval mode: buffers not updated).
# ----------------------------------------------------------------------------
def spectral_norm_weight(weight, u, eps=1e-12):
    OC = weight.shape[0]
    W_mat = weight.reshape(OC, -1)                       # (OC, K)
    W_ng = lax.stop_gradient(W_mat)                      # power iter under no_grad
    v = u @ W_ng                                         # (1, K)
    v = v / jnp.maximum(jnp.linalg.norm(v), eps)         # F.normalize
    u_new = v @ W_ng.T                                   # (1, OC)
    u_new = u_new / jnp.maximum(jnp.linalg.norm(u_new), eps)
    sv = jnp.squeeze((v @ W_mat.T) @ u_new.T)            # sigma (grads flow via W)
    return weight / sv


# ----------------------------------------------------------------------------
# DBlock forward (NCHW external I/O, PyTorch convention)
# ----------------------------------------------------------------------------
def dblock_forward(x, params, *, images_per_block=None,
                   compute_dtype=jnp.float32):
    N, IC, H, W = x.shape
    Hp, Wp = H + 2, W + 2
    SP = _round_up(Hp * Wp, 128)          # per-image lane-padded flattened spatial
    if images_per_block is None:
        # Tiny problem: one program.  For real BigGAN sizes lower this so the
        # "parallel" batch-chunk grid feeds both v7x TensorCores and the
        # per-program footprint stays under v7x's 64 MiB VMEM.
        images_per_block = N
    NB = images_per_block
    assert N % NB == 0
    G = N // NB
    BL = NB * SP

    # Spectral norm (tiny, XLA glue).
    w1 = spectral_norm_weight(params["w1"], params["u1"])
    w2 = spectral_norm_weight(params["w2"], params["u2"])
    wsc = spectral_norm_weight(params["wsc"], params["usc"])
    HID, OC = w1.shape[0], w2.shape[0]

    # Per-tap weight matrices: (OC, IC, 3, 3) -> (9, OC, IC), t = kh*3 + kw.
    w1_t = jnp.transpose(w1, (2, 3, 0, 1)).reshape(9, HID, IC)
    w2_t = jnp.transpose(w2, (2, 3, 0, 1)).reshape(9, OC, HID)
    wsc_t = wsc.reshape(OC, IC)

    # Activations -> (IC, N*SP): zero spatial pad + per-image lane pad.
    # ~1.4x the bytes of x, vs. 9x for an HBM im2col.
    xpad = jnp.pad(x, ((0, 0), (0, 0), (1, 1), (1, 1)))
    xf = jnp.transpose(xpad, (1, 0, 2, 3)).reshape(IC, N, Hp * Wp)
    xf = jnp.pad(xf, ((0, 0), (0, 0), (0, SP - Hp * Wp))).reshape(IC, N * SP)

    # Static mask of real (non-halo, non-pad) output lanes (compile-time const).
    m = np.zeros((Hp, Wp), np.float32)
    m[1:H + 1, 1:W + 1] = 1.0
    m = np.pad(m.reshape(-1), (0, SP - Hp * Wp))
    mask = jnp.asarray(np.tile(m, N)[None, :])            # (1, N*SP)

    kernel = functools.partial(_dblock_kernel, Wp=Wp, compute_dtype=compute_dtype)
    out_flat = pl.pallas_call(
        kernel,
        out_shape=jax.ShapeDtypeStruct((OC, N * SP), jnp.float32),
        grid=(G,),
        in_specs=[
            pl.BlockSpec((IC, BL), lambda g: (0, g)),
            pl.BlockSpec((1, BL), lambda g: (0, g)),
            pl.BlockSpec((9, HID, IC), lambda g: (0, 0, 0)),
            pl.BlockSpec((HID, 1), lambda g: (0, 0)),
            pl.BlockSpec((9, OC, HID), lambda g: (0, 0, 0)),
            pl.BlockSpec((OC, 1), lambda g: (0, 0)),
            pl.BlockSpec((OC, IC), lambda g: (0, 0)),
            pl.BlockSpec((OC, 1), lambda g: (0, 0)),
        ],
        out_specs=pl.BlockSpec((OC, BL), lambda g: (0, g)),
        compiler_params=pltpu.CompilerParams(dimension_semantics=("parallel",)),
    )(xf, mask, w1_t, params["b1"].reshape(HID, 1), w2_t,
      params["b2"].reshape(OC, 1), wsc_t, params["bsc"].reshape(OC, 1))

    # Epilogue (tiny XLA glue): drop halo/pad lanes, back to NCHW.
    out = out_flat.reshape(OC, N, SP)[:, :, :Hp * Wp].reshape(OC, N, Hp, Wp)
    out = out[:, :, 1:H + 1, 1:W + 1]
    return jnp.transpose(out, (1, 0, 2, 3))


# ----------------------------------------------------------------------------
# Pure-JAX reference (for correctness check)
# ----------------------------------------------------------------------------
def dblock_reference(x, params):
    w1 = spectral_norm_weight(params["w1"], params["u1"])
    w2 = spectral_norm_weight(params["w2"], params["u2"])
    wsc = spectral_norm_weight(params["wsc"], params["usc"])

    def conv(v, w, b, pad):
        y = lax.conv_general_dilated(
            v, w, (1, 1), [(pad, pad), (pad, pad)],
            dimension_numbers=("NCHW", "OIHW", "NCHW"),
            precision=lax.Precision.HIGHEST)
        return y + b.reshape(1, -1, 1, 1)

    h = conv(x, w1, params["b1"], 1)
    h = conv(jnp.maximum(h, 0.0), w2, params["b2"], 1)
    return h + conv(x, wsc, params["bsc"], 0)


# ----------------------------------------------------------------------------
# Deterministic parameter init
# ----------------------------------------------------------------------------
def init_params(key, in_ch, hid_ch, out_ch):
    ks = jax.random.split(key, 6)
    scale = 0.1
    return {
        "w1": scale * jax.random.normal(ks[0], (hid_ch, in_ch, 3, 3), jnp.float32),
        "b1": jnp.zeros((hid_ch,), jnp.float32),
        "u1": jax.random.normal(ks[1], (1, hid_ch), jnp.float32),
        "w2": scale * jax.random.normal(ks[2], (out_ch, hid_ch, 3, 3), jnp.float32),
        "b2": jnp.zeros((out_ch,), jnp.float32),
        "u2": jax.random.normal(ks[3], (1, out_ch), jnp.float32),
        "wsc": scale * jax.random.normal(ks[4], (out_ch, in_ch, 1, 1), jnp.float32),
        "bsc": jnp.zeros((out_ch,), jnp.float32),
        "usc": jax.random.normal(ks[5], (1, out_ch), jnp.float32),
    }


if __name__ == "__main__":
    N, IC, OC, H, W = 2, 4, 8, 16, 16
    key = jax.random.PRNGKey(0)
    kx, kp = jax.random.split(key)
    x = jax.random.normal(kx, (N, IC, H, W), jnp.float32)
    params = init_params(kp, IC, OC, OC)   # wide=True -> hidden = out_channels

    out = jax.jit(dblock_forward)(x, params)
    out = jax.block_until_ready(out)
    assert out.shape == (N, OC, H, W) and out.dtype == jnp.float32
    assert bool(jnp.all(jnp.isfinite(out)))

    # Correctness vs. pure-JAX reference (loose tol covers MXU/XLA pass modes).
    ref = jax.block_until_ready(jax.jit(dblock_reference)(x, params))
    max_err = float(jnp.max(jnp.abs(out - ref)))
    assert max_err < 5e-2, f"max abs error {max_err}"

    print("KERNEL_OK")
</pallas_src>

<mosaic_0001>
module attributes {stable_mosaic.version = 11 : i64} {
  func.func @_dblock_kernel(%arg0: i32, %arg1: memref<4x768xf32, #tpu.memory_space<vmem>>, %arg2: memref<1x768xf32, #tpu.memory_space<vmem>>, %arg3: memref<9x8x4xf32, #tpu.memory_space<vmem>>, %arg4: memref<8x1xf32, #tpu.memory_space<vmem>>, %arg5: memref<9x8x8xf32, #tpu.memory_space<vmem>>, %arg6: memref<8x1xf32, #tpu.memory_space<vmem>>, %arg7: memref<8x4xf32, #tpu.memory_space<vmem>>, %arg8: memref<8x1xf32, #tpu.memory_space<vmem>>, %arg9: memref<8x768xf32, #tpu.memory_space<vmem>>) attributes {dimension_semantics = [#tpu.dimension_semantics<parallel>], iteration_bounds = array<i64: 1>, scalar_prefetch = 0 : i64, scratch_operands = 0 : i64, tpu.core_type = #tpu.core_type<tc>, window_params = [{transform_indices = @transform_0, window_bounds = array<i64: 4, 768>}, {transform_indices = @transform_1, window_bounds = array<i64: 1, 768>}, {pipeline_mode = #tpu.pipeline_mode<synchronous>, transform_indices = @transform_2, window_bounds = array<i64: 9, 8, 4>}, {pipeline_mode = #tpu.pipeline_mode<synchronous>, transform_indices = @transform_3, window_bounds = array<i64: 8, 1>}, {pipeline_mode = #tpu.pipeline_mode<synchronous>, transform_indices = @transform_4, window_bounds = array<i64: 9, 8, 8>}, {pipeline_mode = #tpu.pipeline_mode<synchronous>, transform_indices = @transform_5, window_bounds = array<i64: 8, 1>}, {pipeline_mode = #tpu.pipeline_mode<synchronous>, transform_indices = @transform_6, window_bounds = array<i64: 8, 4>}, {pipeline_mode = #tpu.pipeline_mode<synchronous>, transform_indices = @transform_7, window_bounds = array<i64: 8, 1>}, {transform_indices = @transform_8, window_bounds = array<i64: 8, 768>}]} {
    %c0 = arith.constant 0 : index
    %c0_0 = arith.constant 0 : index
    %0 = vector.load %arg1[%c0, %c0_0] : memref<4x768xf32, #tpu.memory_space<vmem>>, vector<4x768xf32>
    %c0_1 = arith.constant 0 : index
    %c0_2 = arith.constant 0 : index
    %1 = vector.load %arg2[%c0_1, %c0_2] : memref<1x768xf32, #tpu.memory_space<vmem>>, vector<1x768xf32>
    %c0_3 = arith.constant 0 : index
    %c0_4 = arith.constant 0 : index
    %c0_5 = arith.constant 0 : index
    %2 = vector.load %arg3[%c0_3, %c0_4, %c0_5] : memref<9x8x4xf32, #tpu.memory_space<vmem>>, vector<1x8x4xf32>
    %3 = vector.shape_cast %2 : vector<1x8x4xf32> to vector<8x4xf32>
    %c19_i32 = arith.constant 19 : i32
    %4 = tpu.dynamic_rotate %0 by %c19_i32 dim 1 : vector<4x768xf32>, i32 -> vector<4x768xf32>
    %cst = arith.constant dense<0.000000e+00> : vector<8x768xf32>
    %5 = tpu.matmul %3, %4, %cst {dimension_numbers = #tpu.dot_dimension_numbers<[1], [0], [0], [1], [0, 0, 1, 1], [], []>} : vector<8x4xf32>, vector<4x768xf32>, vector<8x768xf32> -> vector<8x768xf32>
    %c1 = arith.constant 1 : index
    %c0_6 = arith.constant 0 : index
    %c0_7 = arith.constant 0 : index
    %6 = vector.load %arg3[%c1, %c0_6, %c0_7] : memref<9x8x4xf32, #tpu.memory_space<vmem>>, vector<1x8x4xf32>
    %7 = vector.shape_cast %6 : vector<1x8x4xf32> to vector<8x4xf32>
    %c18_i32 = arith.constant 18 : i32
    %8 = tpu.dynamic_rotate %0 by %c18_i32 dim 1 : vector<4x768xf32>, i32 -> vector<4x768xf32>
    %cst_8 = arith.constant dense<0.000000e+00> : vector<8x768xf32>
    %9 = tpu.matmul %7, %8, %cst_8 {dimension_numbers = #tpu.dot_dimension_numbers<[1], [0], [0], [1], [0, 0, 1, 1], [], []>} : vector<8x4xf32>, vector<4x768xf32>, vector<8x768xf32> -> vector<8x768xf32>
    %10 = arith.addf %5, %9 : vector<8x768xf32>
    %c2 = arith.constant 2 : index
    %c0_9 = arith.constant 0 : index
    %c0_10 = arith.constant 0 : index
    %11 = vector.load %arg3[%c2, %c0_9, %c0_10] : memref<9x8x4xf32, #tpu.memory_space<vmem>>, vector<1x8x4xf32>
    %12 = vector.shape_cast %11 : vector<1x8x4xf32> to vector<8x4xf32>
    %c17_i32 = arith.constant 17 : i32
    %13 = tpu.dynamic_rotate %0 by %c17_i32 dim 1 : vector<4x768xf32>, i32 -> vector<4x768xf32>
    %cst_11 = arith.constant dense<0.000000e+00> : vector<8x768xf32>
    %14 = tpu.matmul %12, %13, %cst_11 {dimension_numbers = #tpu.dot_dimension_numbers<[1], [0], [0], [1], [0, 0, 1, 1], [], []>} : vector<8x4xf32>, vector<4x768xf32>, vector<8x768xf32> -> vector<8x768xf32>
    %15 = arith.addf %10, %14 : vector<8x768xf32>
    %c3 = arith.constant 3 : index
    %c0_12 = arith.constant 0 : index
    %c0_13 = arith.constant 0 : index
    %16 = vector.load %arg3[%c3, %c0_12, %c0_13] : memref<9x8x4xf32, #tpu.memory_space<vmem>>, vector<1x8x4xf32>
    %17 = vector.shape_cast %16 : vector<1x8x4xf32> to vector<8x4xf32>
    %c1_i32 = arith.constant 1 : i32
    %18 = tpu.dynamic_rotate %0 by %c1_i32 dim 1 : vector<4x768xf32>, i32 -> vector<4x768xf32>
    %cst_14 = arith.constant dense<0.000000e+00> : vector<8x768xf32>
    %19 = tpu.matmul %17, %18, %cst_14 {dimension_numbers = #tpu.dot_dimension_numbers<[1], [0], [0], [1], [0, 0, 1, 1], [], []>} : vector<8x4xf32>, vector<4x768xf32>, vector<8x768xf32> -> vector<8x768xf32>
    %20 = arith.addf %15, %19 : vector<8x768xf32>
    %c4 = arith.constant 4 : index
    %c0_15 = arith.constant 0 : index
    %c0_16 = arith.constant 0 : index
    %21 = vector.load %arg3[%c4, %c0_15, %c0_16] : memref<9x8x4xf32, #tpu.memory_space<vmem>>, vector<1x8x4xf32>
    %22 = vector.shape_cast %21 : vector<1x8x4xf32> to vector<8x4xf32>
    %cst_17 = arith.constant dense<0.000000e+00> : vector<8x768xf32>
    %23 = tpu.matmul %22, %0, %cst_17 {dimension_numbers = #tpu.dot_dimension_numbers<[1], [0], [0], [1], [0, 0, 1, 1], [], []>} : vector<8x4xf32>, vector<4x768xf32>, vector<8x768xf32> -> vector<8x768xf32>
    %24 = arith.addf %20, %23 : vector<8x768xf32>
    %c5 = arith.constant 5 : index
    %c0_18 = arith.constant 0 : index
    %c0_19 = arith.constant 0 : index
    %25 = vector.load %arg3[%c5, %c0_18, %c0_19] : memref<9x8x4xf32, #tpu.memory_space<vmem>>, vector<1x8x4xf32>
    %26 = vector.shape_cast %25 : vector<1x8x4xf32> to vector<8x4xf32>
    %c767_i32 = arith.constant 767 : i32
    %27 = tpu.dynamic_rotate %0 by %c767_i32 dim 1 : vector<4x768xf32>, i32 -> vector<4x768xf32>
    %cst_20 = arith.constant dense<0.000000e+00> : vector<8x768xf32>
    %28 = tpu.matmul %26, %27, %cst_20 {dimension_numbers = #tpu.dot_dimension_numbers<[1], [0], [0], [1], [0, 0, 1, 1], [], []>} : vector<8x4xf32>, vector<4x768xf32>, vector<8x768xf32> -> vector<8x768xf32>
    %29 = arith.addf %24, %28 : vector<8x768xf32>
    %c6 = arith.constant 6 : index
    %c0_21 = arith.constant 0 : index
    %c0_22 = arith.constant 0 : index
    %30 = vector.load %arg3[%c6, %c0_21, %c0_22] : memref<9x8x4xf32, #tpu.memory_space<vmem>>, vector<1x8x4xf32>
    %31 = vector.shape_cast %30 : vector<1x8x4xf32> to vector<8x4xf32>
    %c751_i32 = arith.constant 751 : i32
    %32 = tpu.dynamic_rotate %0 by %c751_i32 dim 1 : vector<4x768xf32>, i32 -> vector<4x768xf32>
    %cst_23 = arith.constant dense<0.000000e+00> : vector<8x768xf32>
    %33 = tpu.matmul %31, %32, %cst_23 {dimension_numbers = #tpu.dot_dimension_numbers<[1], [0], [0], [1], [0, 0, 1, 1], [], []>} : vector<8x4xf32>, vector<4x768xf32>, vector<8x768xf32> -> vector<8x768xf32>
    %34 = arith.addf %29, %33 : vector<8x768xf32>
    %c7 = arith.constant 7 : index
    %c0_24 = arith.constant 0 : index
    %c0_25 = arith.constant 0 : index
    %35 = vector.load %arg3[%c7, %c0_24, %c0_25] : memref<9x8x4xf32, #tpu.memory_space<vmem>>, vector<1x8x4xf32>
    %36 = vector.shape_cast %35 : vector<1x8x4xf32> to vector<8x4xf32>
    %c750_i32 = arith.constant 750 : i32
    %37 = tpu.dynamic_rotate %0 by %c750_i32 dim 1 : vector<4x768xf32>, i32 -> vector<4x768xf32>
    %cst_26 = arith.constant dense<0.000000e+00> : vector<8x768xf32>
    %38 = tpu.matmul %36, %37, %cst_26 {dimension_numbers = #tpu.dot_dimension_numbers<[1], [0], [0], [1], [0, 0, 1, 1], [], []>} : vector<8x4xf32>, vector<4x768xf32>, vector<8x768xf32> -> vector<8x768xf32>
    %39 = arith.addf %34, %38 : vector<8x768xf32>
    %c8 = arith.constant 8 : index
    %c0_27 = arith.constant 0 : index
    %c0_28 = arith.constant 0 : index
    %40 = vector.load %arg3[%c8, %c0_27, %c0_28] : memref<9x8x4xf32, #tpu.memory_space<vmem>>, vector<1x8x4xf32>
    %41 = vector.shape_cast %40 : vector<1x8x4xf32> to vector<8x4xf32>
    %c749_i32 = arith.constant 749 : i32
    %42 = tpu.dynamic_rotate %0 by %c749_i32 dim 1 : vector<4x768xf32>, i32 -> vector<4x768xf32>
    %cst_29 = arith.constant dense<0.000000e+00> : vector<8x768xf32>
    %43 = tpu.matmul %41, %42, %cst_29 {dimension_numbers = #tpu.dot_dimension_numbers<[1], [0], [0], [1], [0, 0, 1, 1], [], []>} : vector<8x4xf32>, vector<4x768xf32>, vector<8x768xf32> -> vector<8x768xf32>
    %44 = arith.addf %39, %43 : vector<8x768xf32>
    %c0_30 = arith.constant 0 : index
    %c0_31 = arith.constant 0 : index
    %45 = vector.load %arg4[%c0_30, %c0_31] : memref<8x1xf32, #tpu.memory_space<vmem>>, vector<8x1xf32>
    %46 = vector.broadcast %45 : vector<8x1xf32> to vector<8x768xf32>
    %47 = arith.addf %44, %46 : vector<8x768xf32>
    %cst_32 = arith.constant 0.000000e+00 : f32
    %48 = vector.broadcast %cst_32 : f32 to vector<8x768xf32>
    %49 = arith.maximumf %47, %48 : vector<8x768xf32>
    %50 = vector.broadcast %1 : vector<1x768xf32> to vector<8x768xf32>
    %51 = arith.mulf %49, %50 : vector<8x768xf32>
    %c0_33 = arith.constant 0 : index
    %c0_34 = arith.constant 0 : index
    %c0_35 = arith.constant 0 : index
    %52 = vector.load %arg5[%c0_33, %c0_34, %c0_35] : memref<9x8x8xf32, #tpu.memory_space<vmem>>, vector<1x8x8xf32>
    %53 = vector.shape_cast %52 : vector<1x8x8xf32> to vector<8x8xf32>
    %c19_i32_36 = arith.constant 19 : i32
    %54 = tpu.dynamic_rotate %51 by %c19_i32_36 dim 1 : vector<8x768xf32>, i32 -> vector<8x768xf32>
    %cst_37 = arith.constant dense<0.000000e+00> : vector<8x768xf32>
    %55 = tpu.matmul %53, %54, %cst_37 {dimension_numbers = #tpu.dot_dimension_numbers<[1], [0], [0], [1], [0, 0, 1, 1], [], []>} : vector<8x8xf32>, vector<8x768xf32>, vector<8x768xf32> -> vector<8x768xf32>
    %c1_38 = arith.constant 1 : index
    %c0_39 = arith.constant 0 : index
    %c0_40 = arith.constant 0 : index
    %56 = vector.load %arg5[%c1_38, %c0_39, %c0_40] : memref<9x8x8xf32, #tpu.memory_space<vmem>>, vector<1x8x8xf32>
    %57 = vector.shape_cast %56 : vector<1x8x8xf32> to vector<8x8xf32>
    %c18_i32_41 = arith.constant 18 : i32
    %58 = tpu.dynamic_rotate %51 by %c18_i32_41 dim 1 : vector<8x768xf32>, i32 -> vector<8x768xf32>
    %cst_42 = arith.constant dense<0.000000e+00> : vector<8x768xf32>
    %59 = tpu.matmul %57, %58, %cst_42 {dimension_numbers = #tpu.dot_dimension_numbers<[1], [0], [0], [1], [0, 0, 1, 1], [], []>} : vector<8x8xf32>, vector<8x768xf32>, vector<8x768xf32> -> vector<8x768xf32>
    %60 = arith.addf %55, %59 : vector<8x768xf32>
    %c2_43 = arith.constant 2 : index
    %c0_44 = arith.constant 0 : index
    %c0_45 = arith.constant 0 : index
    %61 = vector.load %arg5[%c2_43, %c0_44, %c0_45] : memref<9x8x8xf32, #tpu.memory_space<vmem>>, vector<1x8x8xf32>
    %62 = vector.shape_cast %61 : vector<1x8x8xf32> to vector<8x8xf32>
    %c17_i32_46 = arith.constant 17 : i32
    %63 = tpu.dynamic_rotate %51 by %c17_i32_46 dim 1 : vector<8x768xf32>, i32 -> vector<8x768xf32>
    %cst_47 = arith.constant dense<0.000000e+00> : vector<8x768xf32>
    %64 = tpu.matmul %62, %63, %cst_47 {dimension_numbers = #tpu.dot_dimension_numbers<[1], [0], [0], [1], [0, 0, 1, 1], [], []>} : vector<8x8xf32>, vector<8x768xf32>, vector<8x768xf32> -> vector<8x768xf32>
    %65 = arith.addf %60, %64 : vector<8x768xf32>
    %c3_48 = arith.constant 3 : index
    %c0_49 = arith.constant 0 : index
    %c0_50 = arith.constant 0 : index
    %66 = vector.load %arg5[%c3_48, %c0_49, %c0_50] : memref<9x8x8xf32, #tpu.memory_space<vmem>>, vector<1x8x8xf32>
    %67 = vector.shape_cast %66 : vector<1x8x8xf32> to vector<8x8xf32>
    %c1_i32_51 = arith.constant 1 : i32
    %68 = tpu.dynamic_rotate %51 by %c1_i32_51 dim 1 : vector<8x768xf32>, i32 -> vector<8x768xf32>
    %cst_52 = arith.constant dense<0.000000e+00> : vector<8x768xf32>
    %69 = tpu.matmul %67, %68, %cst_52 {dimension_numbers = #tpu.dot_dimension_numbers<[1], [0], [0], [1], [0, 0, 1, 1], [], []>} : vector<8x8xf32>, vector<8x768xf32>, vector<8x768xf32> -> vector<8x768xf32>
    %70 = arith.addf %65, %69 : vector<8x768xf32>
    %c4_53 = arith.constant 4 : index
    %c0_54 = arith.constant 0 : index
    %c0_55 = arith.constant 0 : index
    %71 = vector.load %arg5[%c4_53, %c0_54, %c0_55] : memref<9x8x8xf32, #tpu.memory_space<vmem>>, vector<1x8x8xf32>
    %72 = vector.shape_cast %71 : vector<1x8x8xf32> to vector<8x8xf32>
    %cst_56 = arith.constant dense<0.000000e+00> : vector<8x768xf32>
    %73 = tpu.matmul %72, %51, %cst_56 {dimension_numbers = #tpu.dot_dimension_numbers<[1], [0], [0], [1], [0, 0, 1, 1], [], []>} : vector<8x8xf32>, vector<8x768xf32>, vector<8x768xf32> -> vector<8x768xf32>
    %74 = arith.addf %70, %73 : vector<8x768xf32>
    %c5_57 = arith.constant 5 : index
    %c0_58 = arith.constant 0 : index
    %c0_59 = arith.constant 0 : index
    %75 = vector.load %arg5[%c5_57, %c0_58, %c0_59] : memref<9x8x8xf32, #tpu.memory_space<vmem>>, vector<1x8x8xf32>
    %76 = vector.shape_cast %75 : vector<1x8x8xf32> to vector<8x8xf32>
    %c767_i32_60 = arith.constant 767 : i32
    %77 = tpu.dynamic_rotate %51 by %c767_i32_60 dim 1 : vector<8x768xf32>, i32 -> vector<8x768xf32>
    %cst_61 = arith.constant dense<0.000000e+00> : vector<8x768xf32>
    %78 = tpu.matmul %76, %77, %cst_61 {dimension_numbers = #tpu.dot_dimension_numbers<[1], [0], [0], [1], [0, 0, 1, 1], [], []>} : vector<8x8xf32>, vector<8x768xf32>, vector<8x768xf32> -> vector<8x768xf32>
    %79 = arith.addf %74, %78 : vector<8x768xf32>
    %c6_62 = arith.constant 6 : index
    %c0_63 = arith.constant 0 : index
    %c0_64 = arith.constant 0 : index
    %80 = vector.load %arg5[%c6_62, %c0_63, %c0_64] : memref<9x8x8xf32, #tpu.memory_space<vmem>>, vector<1x8x8xf32>
    %81 = vector.shape_cast %80 : vector<1x8x8xf32> to vector<8x8xf32>
    %c751_i32_65 = arith.constant 751 : i32
    %82 = tpu.dynamic_rotate %51 by %c751_i32_65 dim 1 : vector<8x768xf32>, i32 -> vector<8x768xf32>
    %cst_66 = arith.constant dense<0.000000e+00> : vector<8x768xf32>
    %83 = tpu.matmul %81, %82, %cst_66 {dimension_numbers = #tpu.dot_dimension_numbers<[1], [0], [0], [1], [0, 0, 1, 1], [], []>} : vector<8x8xf32>, vector<8x768xf32>, vector<8x768xf32> -> vector<8x768xf32>
    %84 = arith.addf %79, %83 : vector<8x768xf32>
    %c7_67 = arith.constant 7 : index
    %c0_68 = arith.constant 0 : index
    %c0_69 = arith.constant 0 : index
    %85 = vector.load %arg5[%c7_67, %c0_68, %c0_69] : memref<9x8x8xf32, #tpu.memory_space<vmem>>, vector<1x8x8xf32>
    %86 = vector.shape_cast %85 : vector<1x8x8xf32> to vector<8x8xf32>
    %c750_i32_70 = arith.constant 750 : i32
    %87 = tpu.dynamic_rotate %51 by %c750_i32_70 dim 1 : vector<8x768xf32>, i32 -> vector<8x768xf32>
    %cst_71 = arith.constant dense<0.000000e+00> : vector<8x768xf32>
    %88 = tpu.matmul %86, %87, %cst_71 {dimension_numbers = #tpu.dot_dimension_numbers<[1], [0], [0], [1], [0, 0, 1, 1], [], []>} : vector<8x8xf32>, vector<8x768xf32>, vector<8x768xf32> -> vector<8x768xf32>
    %89 = arith.addf %84, %88 : vector<8x768xf32>
    %c8_72 = arith.constant 8 : index
    %c0_73 = arith.constant 0 : index
    %c0_74 = arith.constant 0 : index
    %90 = vector.load %arg5[%c8_72, %c0_73, %c0_74] : memref<9x8x8xf32, #tpu.memory_space<vmem>>, vector<1x8x8xf32>
    %91 = vector.shape_cast %90 : vector<1x8x8xf32> to vector<8x8xf32>
    %c749_i32_75 = arith.constant 749 : i32
    %92 = tpu.dynamic_rotate %51 by %c749_i32_75 dim 1 : vector<8x768xf32>, i32 -> vector<8x768xf32>
    %cst_76 = arith.constant dense<0.000000e+00> : vector<8x768xf32>
    %93 = tpu.matmul %91, %92, %cst_76 {dimension_numbers = #tpu.dot_dimension_numbers<[1], [0], [0], [1], [0, 0, 1, 1], [], []>} : vector<8x8xf32>, vector<8x768xf32>, vector<8x768xf32> -> vector<8x768xf32>
    %94 = arith.addf %89, %93 : vector<8x768xf32>
    %c0_77 = arith.constant 0 : index
    %c0_78 = arith.constant 0 : index
    %95 = vector.load %arg6[%c0_77, %c0_78] : memref<8x1xf32, #tpu.memory_space<vmem>>, vector<8x1xf32>
    %96 = vector.broadcast %95 : vector<8x1xf32> to vector<8x768xf32>
    %97 = arith.addf %94, %96 : vector<8x768xf32>
    %c0_79 = arith.constant 0 : index
    %c0_80 = arith.constant 0 : index
    %98 = vector.load %arg7[%c0_79, %c0_80] : memref<8x4xf32, #tpu.memory_space<vmem>>, vector<8x4xf32>
    %cst_81 = arith.constant dense<0.000000e+00> : vector<8x768xf32>
    %99 = tpu.matmul %98, %0, %cst_81 {dimension_numbers = #tpu.dot_dimension_numbers<[1], [0], [0], [1], [0, 0, 1, 1], [], []>} : vector<8x4xf32>, vector<4x768xf32>, vector<8x768xf32> -> vector<8x768xf32>
    %c0_82 = arith.constant 0 : index
    %c0_83 = arith.constant 0 : index
    %100 = vector.load %arg8[%c0_82, %c0_83] : memref<8x1xf32, #tpu.memory_space<vmem>>, vector<8x1xf32>
    %101 = vector.broadcast %100 : vector<8x1xf32> to vector<8x768xf32>
    %102 = arith.addf %99, %101 : vector<8x768xf32>
    %103 = arith.addf %97, %102 : vector<8x768xf32>
    %c0_84 = arith.constant 0 : index
    %c0_85 = arith.constant 0 : index
    %104 = vector.load %arg9[%c0_84, %c0_85] : memref<8x768xf32, #tpu.memory_space<vmem>>, vector<8x768xf32>
    tpu.vector_store %arg9[%c0_84, %c0_85], %103 {strides = array<i32>} : memref<8x768xf32, #tpu.memory_space<vmem>>, vector<8x768xf32>,
    return
  }
  func.func @transform_0(%arg0: i32) -> (i32, i32) {
    %c0_i32 = arith.constant 0 : i32
    %c0_i32_0 = arith.constant 0 : i32
    return %c0_i32, %arg0 : i32, i32
  }
  func.func @transform_1(%arg0: i32) -> (i32, i32) {
    %c0_i32 = arith.constant 0 : i32
    %c0_i32_0 = arith.constant 0 : i32
    return %c0_i32, %arg0 : i32, i32
  }
  func.func @transform_2(%arg0: i32) -> (i32, i32, i32) {
    %c0_i32 = arith.constant 0 : i32
    %c0_i32_0 = arith.constant 0 : i32
    %c0_i32_1 = arith.constant 0 : i32
    %c0_i32_2 = arith.constant 0 : i32
    return %c0_i32, %c0_i32_0, %c0_i32_1 : i32, i32, i32
  }
  func.func @transform_3(%arg0: i32) -> (i32, i32) {
    %c0_i32 = arith.constant 0 : i32
    %c0_i32_0 = arith.constant 0 : i32
    %c0_i32_1 = arith.constant 0 : i32
    return %c0_i32, %c0_i32_0 : i32, i32
  }
  func.func @transform_4(%arg0: i32) -> (i32, i32, i32) {
    %c0_i32 = arith.constant 0 : i32
    %c0_i32_0 = arith.constant 0 : i32
    %c0_i32_1 = arith.constant 0 : i32
    %c0_i32_2 = arith.constant 0 : i32
    return %c0_i32, %c0_i32_0, %c0_i32_1 : i32, i32, i32
  }
  func.func @transform_5(%arg0: i32) -> (i32, i32) {
    %c0_i32 = arith.constant 0 : i32
    %c0_i32_0 = arith.constant 0 : i32
    %c0_i32_1 = arith.constant 0 : i32
    return %c0_i32, %c0_i32_0 : i32, i32
  }
  func.func @transform_6(%arg0: i32) -> (i32, i32) {
    %c0_i32 = arith.constant 0 : i32
    %c0_i32_0 = arith.constant 0 : i32
    %c0_i32_1 = arith.constant 0 : i32
    return %c0_i32, %c0_i32_0 : i32, i32
  }
  func.func @transform_7(%arg0: i32) -> (i32, i32) {
    %c0_i32 = arith.constant 0 : i32
    %c0_i32_0 = arith.constant 0 : i32
    %c0_i32_1 = arith.constant 0 : i32
    return %c0_i32, %c0_i32_0 : i32, i32
  }
  func.func @transform_8(%arg0: i32) -> (i32, i32) {
    %c0_i32 = arith.constant 0 : i32
    %c0_i32_0 = arith.constant 0 : i32
    return %c0_i32, %arg0 : i32, i32
  }
}

</mosaic_0001>

<bundles_post_ra>
// kernel: dblock_forward.1
= control target key start
LH: loop header
LB: loop body
LE: loop exit
PB: predicated region body
PF: predicated region fallthrough
CT: control target
= control target key end

     0   :  { %v5076_v2 = vmov 0.0   ;;  %s5077_s9 = smov 18   ;;  %s5078_s12 = smov 19   ;;  %v5085_v7 = vmov 0   ;;  %v55_v9 = vlaneseq  ;;  %vm89_vm1 = vcmask 1043456   ;;  %s5864_s0 = inlined_call_operand.vmem [shape: f32[4,768], index: 0, kind: input, shape index: {}]   ;;  %s5865_s3 = inlined_call_operand.vmem [shape: f32[8,1], index: 3, kind: input, shape index: {}]   ;;  %s5866_s2 = inlined_call_operand.vmem [shape: f32[9,8,4], index: 2, kind: input, shape index: {}]   ;;  %s5867_s1 = inlined_call_operand.vmem [shape: f32[1,768], index: 1, kind: input, shape index: {}]   ;;  %s5868_s5 = inlined_call_operand.vmem [shape: f32[8,1], index: 5, kind: input, shape index: {}]   ;;  %s5869_s7 = inlined_call_operand.vmem [shape: f32[8,1], index: 7, kind: input, shape index: {}]   ;;  %s5870_s4 = inlined_call_operand.vmem [shape: f32[9,8,8], index: 4, kind: input, shape index: {}]   ;;  %s5871_s6 = inlined_call_operand.vmem [shape: f32[8,4], index: 6, kind: input, shape index: {}]   ;;  %s5872_s8 = inlined_call_operand.vmem [shape: f32[8,768], index: 8, kind: output, shape index: {}]  }
   0x1   :  { %v5134_v0 = vld [vmem:[%s5864_s0] sm:$0xff]  ;;  %v5139_v1 = vld [vmem:[%s5864_s0 + $0x10] sm:$0xff]  ;;  %172 = vmatprep.mubr.f32.mxu0 %v5076_v2  ;;  %2590 = vmatprep.mubr.f32.mxu1 %v5076_v2  ;;  %v5156_v5 = vld [vmem:[%s5864_s0 + $0x8] sm:$0xff]  ;;  %s5079_s13 = smov 17   ;;  %s5080_s14 = smov 1   ;;  %vm85_vm2 = vcmask 31744  }
   0x2   :  { %66 = vrot.lane.b32.xlu0 %v5134_v0, %s5077_s9  ;;  %v5147_v3 = vcombine.high %v5139_v1, %v5139_v1  ;;  %v5151_v4 = vcombine.high %v5134_v0, %v5134_v0  ;;  %v5164_v6 = vcombine.high %v5156_v5, %v5156_v5  ;;  %s5081_s15 = smov 127   ;;  %s5082_s16 = smov 111   ;;  %v2357_v8 = vld [vmem:[%s5865_s3] sm:$0xff]  ;;  %5069 = vset.pattern.permute.xlu1 %v5085_v7  ;;  %v5260_v10 = vand.u32 127, %v55_v9  ;;  %v4811_v15 = vld [vmem:[%s5866_s2 + $0x8] sm:$0xff]  ;;  %v4830_v42 = vld [vmem:[%s5866_s2 + $0x10] sm:$0xff] }
   0x3   :  { %s5083_s17 = smov 110   ;;  %s5084_s18 = smov 109   ;;  %5068 = vset.pattern.permute.xlu0 %v5085_v7  ;;  %v33_v29 = vld [vmem:[%s5866_s2] sm:$0xff]  ;;  %v4840_v55 = vld [vmem:[%s5866_s2 + $0x18] sm:$0xff]  ;;  %vm2451_vm10 = vcmask 64512  }
   0x4   :  { %76 = vrot.lane.b32.xlu1 %v5147_v3, %s5077_s9  ;;  %vm78_vm0 = vcmp.lt.s32.totalorder %v5260_v10, 18  ;;  %vm57_vm3 = vcmp.lt.s32.totalorder %v5260_v10, 19  ;;  %vm569_vm4 = vcmp.lt.s32.totalorder %v5260_v10, 17  ;;  %vm830_vm5 = vcmp.lt.s32.totalorder %v5260_v10, 1 }
   0x5   :  { %vm1327_vm6 = vcmp.lt.s32.totalorder %v5260_v10, 127  ;;  %vm1588_vm7 = vcmp.lt.s32.totalorder %v5260_v10, 111  ;;  %vm1849_vm8 = vcmp.lt.s32.totalorder %v5260_v10, 110  ;;  %vm2110_vm9 = vcmp.lt.s32.totalorder %v5260_v10, 109  ;;  %v4572_v10 = vld [vmem:[%s5871_s6] sm:$0xff] }
   0x6   :  { %68 = vrot.lane.b32.xlu0 %v5151_v4, %s5077_s9 }
   0x8   :  { %70 = vrot.lane.b32.xlu1 %v5156_v5, %s5077_s9 }
   0xa   :  { %72 = vrot.lane.b32.xlu0 %v5164_v6, %s5077_s9 }
   0xc   :  { %74 = vrot.lane.b32.xlu1 %v5139_v1, %s5077_s9 }
   0xe   :  { %43 = vrot.lane.b32.xlu0 %v5134_v0, %s5078_s12 }
  0x10   :  { %45 = vrot.lane.b32.xlu1 %v5151_v4, %s5078_s12 }
  0x12   :  { %53 = vrot.lane.b32.xlu0 %v5147_v3, %s5078_s12 }
  0x14   :  { %47 = vrot.lane.b32.xlu1 %v5156_v5, %s5078_s12 }
  0x16   :  { %49 = vrot.lane.b32.xlu0 %v5164_v6, %s5078_s12 }
  0x18   :  { %51 = vrot.lane.b32.xlu1 %v5139_v1, %s5078_s12 }
  0x1a   :  { %557 = vrot.lane.b32.xlu0 %v5134_v0, %s5079_s13 }
  0x1c   :  { %559 = vrot.lane.b32.xlu1 %v5151_v4, %s5079_s13 }
  0x1e   :  { %567 = vrot.lane.b32.xlu0 %v5147_v3, %s5079_s13 }
  0x20   :  { %561 = vrot.lane.b32.xlu1 %v5156_v5, %s5079_s13 }
  0x22   :  { %563 = vrot.lane.b32.xlu0 %v5164_v6, %s5079_s13 }
  0x24   :  { %565 = vrot.lane.b32.xlu1 %v5139_v1, %s5079_s13 }
  0x26   :  { %818 = vrot.lane.b32.xlu0 %v5134_v0, %s5080_s14 }
  0x28   :  { %820 = vrot.lane.b32.xlu1 %v5151_v4, %s5080_s14 }
  0x2a   :  { %828 = vrot.lane.b32.xlu0 %v5147_v3, %s5080_s14 }
  0x2c   :  { %822 = vrot.lane.b32.xlu1 %v5156_v5, %s5080_s14 }
  0x2e   :  { %824 = vrot.lane.b32.xlu0 %v5164_v6, %s5080_s14 }
  0x30   :  { %826 = vrot.lane.b32.xlu1 %v5139_v1, %s5080_s14 }
  0x32   :  { %1317 = vrot.lane.b32.xlu0 %v5151_v4, %s5081_s15 }
  0x34   :  { %1319 = vrot.lane.b32.xlu1 %v5156_v5, %s5081_s15 }
  0x36   :  { %1315 = vrot.lane.b32.xlu0 %v5134_v0, %s5081_s15 }
  0x38   :  { %1321 = vrot.lane.b32.xlu1 %v5164_v6, %s5081_s15 }
  0x3a   :  { %1323 = vrot.lane.b32.xlu0 %v5139_v1, %s5081_s15 }
  0x3c   :  { %1325 = vrot.lane.b32.xlu1 %v5147_v3, %s5081_s15 }
  0x3e   :  { %1578 = vrot.lane.b32.xlu0 %v5151_v4, %s5082_s16 }
  0x40   :  { %1580 = vrot.lane.b32.xlu1 %v5156_v5, %s5082_s16 }
  0x42   :  { %1576 = vrot.lane.b32.xlu0 %v5134_v0, %s5082_s16 }
  0x44   :  { %1582 = vrot.lane.b32.xlu1 %v5164_v6, %s5082_s16 }
  0x46   :  { %1584 = vrot.lane.b32.xlu0 %v5139_v1, %s5082_s16 }
  0x48   :  { %1586 = vrot.lane.b32.xlu1 %v5147_v3, %s5082_s16 }
  0x4a   :  { %1839 = vrot.lane.b32.xlu0 %v5151_v4, %s5083_s17 }
  0x4c   :  { %1841 = vrot.lane.b32.xlu1 %v5156_v5, %s5083_s17 }
  0x4e   :  { %1837 = vrot.lane.b32.xlu0 %v5134_v0, %s5083_s17 }
  0x50   :  { %1843 = vrot.lane.b32.xlu1 %v5164_v6, %s5083_s17 }
  0x52   :  { %1845 = vrot.lane.b32.xlu0 %v5139_v1, %s5083_s17 }
  0x54   :  { %1847 = vrot.lane.b32.xlu1 %v5147_v3, %s5083_s17 }
  0x56   :  { %2100 = vrot.lane.b32.xlu0 %v5151_v4, %s5084_s18 }
  0x58   :  { %2102 = vrot.lane.b32.xlu1 %v5156_v5, %s5084_s18 }
  0x5a   :  { %2098 = vrot.lane.b32.xlu0 %v5134_v0, %s5084_s18 }
  0x5c   :  { %2104 = vrot.lane.b32.xlu1 %v5164_v6, %s5084_s18 }
  0x5e   :  { %2106 = vrot.lane.b32.xlu0 %v5139_v1, %s5084_s18 }
  0x60   :  { %2108 = vrot.lane.b32.xlu1 %v5147_v3, %s5084_s18 }
  0x62   :  { %2360 = vperm.xlu0 %5068, %v2357_v8  }
  0x74   :  { %v67_v11 = vpop.permute.xlu0 %66 }
  0x76   :  { %v77_v12 = vpop.permute.xlu1 %76 }
  0x77   :  { %v84_v17 = vsel %vm78_vm0, %v77_v12, %v67_v11 }
  0x78   :  { %v69_v13 = vpop.permute.xlu0 %68 }
  0x79   :  { %v83_v14 = vsel %vm78_vm0, %v67_v11, %v69_v13  ;;  %v4850_v11 = vld [vmem:[%s5866_s2 + $0x20] sm:$0xff] }
  0x7a   :  { %v71_v16 = vpop.permute.xlu1 %70  ;;  %4812 = vmatprep.subr.msk.mxu0 %vm89_vm1, %v83_v14 }
  0x7b   :  { %4813 = vmatpush1.msk.msra.mxu0 %vm89_vm1, %v84_v17  ;;  %v82_v20 = vsel %vm78_vm0, %v69_v13, %v71_v16 }
  0x7c   :  { %4814 = vmatmul.mubr.msk.f32.vlgmr.msra.gmra.mrb[0].mxu0 %vm85_vm2, %v4811_v15  ;;  %v73_v18 = vpop.permute.xlu0 %72 }
  0x7d   :  { %v81_v19 = vsel %vm78_vm0, %v71_v16, %v73_v18  ;;  %243 = vmatprep.mubr.f32.mxu0 %v5076_v2 }
  0x7e   :  { %v75_v21 = vpop.permute.xlu1 %74  ;;  %4815 = vmatprep.subr.msk.mxu0 %vm89_vm1, %v81_v19 }
  0x7f   :  { %v79_v22 = vsel %vm78_vm0, %v75_v21, %v77_v12  ;;  %v80_v23 = vsel %vm78_vm0, %v73_v18, %v75_v21  ;;  %4816 = vmatpush1.msk.msra.mxu0 %vm89_vm1, %v82_v20 }
  0x80   :  { %4817 = vmatmul.mubr.msk.f32.vlgmr.msra.gmra.mrb[2].mxu0 %vm85_vm2, %v4811_v15  ;;  %4818 = vmatprep.subr.msk.mxu0 %vm89_vm1, %v79_v22  ;;  %v44_v24 = vpop.permute.xlu0 %43 }
  0x81   :  { %4819 = vmatpush1.msk.msra.mxu0 %vm89_vm1, %v80_v23  ;;  %314 = vmatprep.mubr.f32.mxu0 %v5076_v2 }
  0x82   :  { %v46_v25 = vpop.permute.xlu1 %45 }
  0x83   :  { %v62_v26 = vsel %vm57_vm3, %v44_v24, %v46_v25 }
  0x84   :  { %4820 = vmatmul.mubr.msk.f32.vlgmr.msra.gmra.mrb[4].mxu0 %vm85_vm2, %v4811_v15  ;;  %4821 = vmatprep.subr.msk.mxu0 %vm89_vm1, %v62_v26  ;;  %v54_v27 = vpop.permute.xlu0 %53 }
  0x85   :  { %v63_v28 = vsel %vm57_vm3, %v54_v27, %v44_v24  ;;  %406 = vmatprep.mubr.f32.mxu0 %v5076_v2 }
  0x86   :  { %v48_v30 = vpop.permute.xlu1 %47  ;;  %4822 = vmatpush1.msk.msra.mxu0 %vm89_vm1, %v63_v28 }
  0x87   :  { %v61_v33 = vsel %vm57_vm3, %v46_v25, %v48_v30 }
  0x88   :  { %4823 = vmatmul.mubr.msk.f32.vlgmr.msra.gmra.mrb[0].mxu0 %vm85_vm2, %v33_v29  ;;  %v50_v31 = vpop.permute.xlu0 %49 }
  0x89   :  { %v60_v32 = vsel %vm57_vm3, %v48_v30, %v50_v31  ;;  %477 = vmatprep.mubr.f32.mxu0 %v5076_v2 }
  0x8a   :  { %v52_v34 = vpop.permute.xlu1 %51  ;;  %4824 = vmatprep.subr.msk.mxu0 %vm89_vm1, %v60_v32 }
  0x8b   :  { %v58_v35 = vsel %vm57_vm3, %v52_v34, %v54_v27  ;;  %v59_v36 = vsel %vm57_vm3, %v50_v31, %v52_v34  ;;  %4825 = vmatpush1.msk.msra.mxu0 %vm89_vm1, %v61_v33  ;;  %v4870_v31 = vld [vmem:[%s5866_s2 + $0x30] sm:$0xff] }
  0x8c   :  { %4826 = vmatmul.mubr.msk.f32.vlgmr.msra.gmra.mrb[2].mxu0 %vm85_vm2, %v33_v29  ;;  %4827 = vmatprep.subr.msk.mxu0 %vm89_vm1, %v58_v35  ;;  %v558_v37 = vpop.permute.xlu0 %557 }
  0x8d   :  { %4828 = vmatpush1.msk.msra.mxu0 %vm89_vm1, %v59_v36  ;;  %548 = vmatprep.mubr.f32.mxu0 %v5076_v2 }
  0x8e   :  { %v560_v38 = vpop.permute.xlu1 %559 }
  0x8f   :  { %v574_v39 = vsel %vm569_vm4, %v558_v37, %v560_v38 }
  0x90   :  { %4829 = vmatmul.mubr.msk.f32.vlgmr.msra.gmra.mrb[4].mxu0 %vm85_vm2, %v33_v29  ;;  %4831 = vmatprep.subr.msk.mxu0 %vm89_vm1, %v574_v39  ;;  %v568_v40 = vpop.permute.xlu0 %567 }
  0x91   :  { %v575_v41 = vsel %vm569_vm4, %v568_v40, %v558_v37  ;;  %661 = vmatprep.mubr.f32.mxu0 %v5076_v2 }
  0x92   :  { %v562_v43 = vpop.permute.xlu1 %561  ;;  %4832 = vmatpush1.msk.msra.mxu0 %vm89_vm1, %v575_v41 }
  0x93   :  { %v573_v46 = vsel %vm569_vm4, %v560_v38, %v562_v43 }
  0x94   :  { %4833 = vmatmul.mubr.msk.f32.vlgmr.msra.gmra.mrb[0].mxu0 %vm85_vm2, %v4830_v42  ;;  %v564_v44 = vpop.permute.xlu0 %563 }
  0x95   :  { %v572_v45 = vsel %vm569_vm4, %v562_v43, %v564_v44  ;;  %732 = vmatprep.mubr.f32.mxu0 %v5076_v2 }
  0x96   :  { %v566_v47 = vpop.permute.xlu1 %565  ;;  %4834 = vmatprep.subr.msk.mxu0 %vm89_vm1, %v572_v45 }
  0x97   :  { %v570_v48 = vsel %vm569_vm4, %v566_v47, %v568_v40  ;;  %v571_v49 = vsel %vm569_vm4, %v564_v44, %v566_v47  ;;  %4835 = vmatpush1.msk.msra.mxu0 %vm89_vm1, %v573_v46 }
  0x98   :  { %4836 = vmatmul.mubr.msk.f32.vlgmr.msra.gmra.mrb[2].mxu0 %vm85_vm2, %v4830_v42  ;;  %4837 = vmatprep.subr.msk.mxu0 %vm89_vm1, %v570_v48  ;;  %v819_v50 = vpop.permute.xlu0 %818 }
  0x99   :  { %4838 = vmatpush1.msk.msra.mxu0 %vm89_vm1, %v571_v49  ;;  %803 = vmatprep.mubr.f32.mxu0 %v5076_v2 }
  0x9a   :  { %v821_v51 = vpop.permute.xlu1 %820 }
  0x9b   :  { %v835_v52 = vsel %vm830_vm5, %v819_v50, %v821_v51 }
  0x9c   :  { %4839 = vmatmul.mubr.msk.f32.vlgmr.msra.gmra.mrb[4].mxu0 %vm85_vm2, %v4830_v42  ;;  %4841 = vmatprep.subr.msk.mxu0 %vm89_vm1, %v835_v52  ;;  %v829_v53 = vpop.permute.xlu0 %828  ;;  %v4880_v42 = vld [vmem:[%s5866_s2 + $0x38] sm:$0xff] }
  0x9d   :  { %v836_v54 = vsel %vm830_vm5, %v829_v53, %v819_v50  ;;  %922 = vmatprep.mubr.f32.mxu0 %v5076_v2 }
  0x9e   :  { %v823_v56 = vpop.permute.xlu1 %822  ;;  %4842 = vmatpush1.msk.msra.mxu0 %vm89_vm1, %v836_v54 }
  0x9f   :  { %v834_v59 = vsel %vm830_vm5, %v821_v51, %v823_v56 }
  0xa0   :  { %4843 = vmatmul.mubr.msk.f32.vlgmr.msra.gmra.mrb[0].mxu0 %vm85_vm2, %v4840_v55  ;;  %v825_v57 = vpop.permute.xlu0 %824 }
  0xa1   :  { %v833_v58 = vsel %vm830_vm5, %v823_v56, %v825_v57  ;;  %993 = vmatprep.mubr.f32.mxu0 %v5076_v2 }
  0xa2   :  { %v827_v60 = vpop.permute.xlu1 %826  ;;  %4844 = vmatprep.subr.msk.mxu0 %vm89_vm1, %v833_v58  ;;  %v2377_v58 = vshrl.u32 %v55_v9, 7 }
  0xa3   :  { %v831_v61 = vsel %vm830_vm5, %v827_v60, %v829_v53  ;;  %v832_v62 = vsel %vm830_vm5, %v825_v57, %v827_v60  ;;  %4845 = vmatpush1.msk.msra.mxu0 %vm89_vm1, %v834_v59  ;;  %v4890_v53 = vld [vmem:[%s5866_s2 + $0x40] sm:$0xff] }
  0xa4   :  { %4846 = vmatmul.mubr.msk.f32.vlgmr.msra.gmra.mrb[2].mxu0 %vm85_vm2, %v4840_v55  ;;  %4847 = vmatprep.subr.msk.mxu0 %vm89_vm1, %v831_v61  ;;  %v1318_v63 = vpop.permute.xlu0 %1317  ;;  %v2378_v59 = vsub.s32 0, %v2377_v58  ;;  %v32_v61 = vld [vmem:[%s5867_s1] sm:$0x3f] }
  0xa5   :  { %4848 = vmatpush1.msk.msra.mxu0 %vm89_vm1, %v832_v62  ;;  %1064 = vmatprep.mubr.f32.mxu0 %v5076_v2  ;;  %v2382_v62 = vsub.s32 1, %v2377_v58 }
  0xa6   :  { %4851 = vmatprep.subr.msk.mxu0 %vm89_vm1, %v5151_v4  ;;  %v1320_v7 = vpop.permute.xlu1 %1319 }
  0xa7   :  { %v1331_v14 = vsel %vm1327_vm6, %v1318_v63, %v1320_v7 }
  0xa8   :  { %4849 = vmatmul.mubr.msk.f32.vlgmr.msra.gmra.mrb[4].mxu0 %vm85_vm2, %v4840_v55  ;;  %v1316_v8 = vpop.permute.xlu0 %1315 }
  0xa9   :  { %4852 = vmatpush1.msk.msra.mxu0 %vm89_vm1, %v5134_v0  ;;  %1158 = vmatprep.mubr.f32.mxu0 %v5076_v2  ;;  %v1332_v17 = vsel %vm1327_vm6, %v1316_v8, %v1318_v63 }
  0xaa   :  { %4854 = vmatprep.subr.msk.mxu0 %vm89_vm1, %v5164_v6  ;;  %v1322_v12 = vpop.permute.xlu1 %1321 }
  0xab   :  { %v1330_v20 = vsel %vm1327_vm6, %v1320_v7, %v1322_v12 }
  0xac   :  { %4853 = vmatmul.mubr.msk.f32.vlgmr.msra.gmra.mrb[0].mxu0 %vm85_vm2, %v4850_v11  ;;  %v1324_v13 = vpop.permute.xlu0 %1323 }
  0xad   :  { %4855 = vmatpush1.msk.msra.mxu0 %vm89_vm1, %v5156_v5  ;;  %1229 = vmatprep.mubr.f32.mxu0 %v5076_v2  ;;  %v1329_v16 = vsel %vm1327_vm6, %v1322_v12, %v1324_v13  ;;  %v2386_v12 = vsub.s32 2, %v2377_v58 }
  0xae   :  { %4857 = vmatprep.subr.msk.mxu0 %vm89_vm1, %v5147_v3  ;;  %v1326_v0 = vpop.permute.xlu1 %1325 }
  0xaf   :  { %v1333_v22 = vsel %vm1327_vm6, %v1326_v0, %v1316_v8  ;;  %v1328_v25 = vsel %vm1327_vm6, %v1324_v13, %v1326_v0  ;;  %v2383_v0 = vrot.slane %v32_v61, %v2382_v62 }
  0xb0   :  { %4856 = vmatmul.mubr.msk.f32.vlgmr.msra.gmra.mrb[2].mxu0 %vm85_vm2, %v4850_v11  ;;  %v1579_v15 = vpop.permute.xlu0 %1578 }
  0xb1   :  { %4858 = vmatpush1.msk.msra.mxu0 %vm89_vm1, %v5139_v1  ;;  %1300 = vmatprep.mubr.f32.mxu0 %v5076_v2  ;;  %v4860_v1 = vld [vmem:[%s5866_s2 + $0x28] sm:$0xff] }
  0xb2   :  { %4861 = vmatprep.subr.msk.mxu0 %vm89_vm1, %v1331_v14  ;;  %v1581_v5 = vpop.permute.xlu1 %1580 }
  0xb3   :  { %v1592_v24 = vsel %vm1588_vm7, %v1579_v15, %v1581_v5 }
  0xb4   :  { %4859 = vmatmul.mubr.msk.f32.vlgmr.msra.gmra.mrb[4].mxu0 %vm85_vm2, %v4850_v11  ;;  %v1577_v18 = vpop.permute.xlu0 %1576  ;;  %v2379_v11 = vrot.slane %v32_v61, %v2378_v59 }
  0xb5   :  { %4862 = vmatpush1.msk.msra.mxu0 %vm89_vm1, %v1332_v17  ;;  %1419 = vmatprep.mubr.f32.mxu0 %v5076_v2  ;;  %v1593_v29 = vsel %vm1588_vm7, %v1577_v18, %v1579_v15 }
  0xb6   :  { %4864 = vmatprep.subr.msk.mxu0 %vm89_vm1, %v1329_v16  ;;  %v1583_v19 = vpop.permute.xlu1 %1582  ;;  %v2390_v16 = vsub.s32 3, %v2377_v58 }
  0xb7   :  { %v1591_v33 = vsel %vm1588_vm7, %v1581_v5, %v1583_v19 }
  0xb8   :  { %4863 = vmatmul.mubr.msk.f32.vlgmr.msra.gmra.mrb[0].mxu0 %vm85_vm2, %v4860_v1  ;;  %v1585_v21 = vpop.permute.xlu0 %1584 }
  0xb9   :  { %4865 = vmatpush1.msk.msra.mxu0 %vm89_vm1, %v1330_v20  ;;  %1490 = vmatprep.mubr.f32.mxu0 %v5076_v2  ;;  %v1590_v28 = vsel %vm1588_vm7, %v1583_v19, %v1585_v21 }
  0xba   :  { %4867 = vmatprep.subr.msk.mxu0 %vm89_vm1, %v1333_v22  ;;  %v1587_v23 = vpop.permute.xlu1 %1586 }
  0xbb   :  { %v1594_v35 = vsel %vm1588_vm7, %v1587_v23, %v1577_v18  ;;  %v1589_v37 = vsel %vm1588_vm7, %v1585_v21, %v1587_v23  ;;  %v2387_v18 = vrot.slane %v32_v61, %v2386_v12  ;;  %v2398_v21 = vsub.s32 5, %v2377_v58 }
  0xbc   :  { %4866 = vmatmul.mubr.msk.f32.vlgmr.msra.gmra.mrb[2].mxu0 %vm85_vm2, %v4860_v1  ;;  %v1840_v26 = vpop.permute.xlu0 %1839  ;;  %v2391_v23 = vrot.slane %v32_v61, %v2390_v16 }
  0xbd   :  { %4868 = vmatpush1.msk.msra.mxu0 %vm89_vm1, %v1328_v25  ;;  %1561 = vmatprep.mubr.f32.mxu0 %v5076_v2 }
  0xbe   :  { %4871 = vmatprep.subr.msk.mxu0 %vm89_vm1, %v1592_v24  ;;  %v1842_v27 = vpop.permute.xlu1 %1841 }
  0xbf   :  { %v1853_v36 = vsel %vm1849_vm8, %v1840_v26, %v1842_v27 }
  0xc0   :  { %4869 = vmatmul.mubr.msk.f32.vlgmr.msra.gmra.mrb[4].mxu0 %vm85_vm2, %v4860_v1  ;;  %v1838_v30 = vpop.permute.xlu0 %1837 }
  0xc1   :  { %4872 = vmatpush1.msk.msra.mxu0 %vm89_vm1, %v1593_v29  ;;  %1680 = vmatprep.mubr.f32.mxu0 %v5076_v2  ;;  %v1854_v41 = vsel %vm1849_vm8, %v1838_v30, %v1840_v26 }
  0xc2   :  { %4874 = vmatprep.subr.msk.mxu0 %vm89_vm1, %v1590_v28  ;;  %v1844_v32 = vpop.permute.xlu1 %1843  ;;  %v2394_v28 = vsub.s32 4, %v2377_v58 }
  0xc3   :  { %v1852_v45 = vsel %vm1849_vm8, %v1842_v27, %v1844_v32 }
  0xc4   :  { %4873 = vmatmul.mubr.msk.f32.vlgmr.msra.gmra.mrb[0].mxu0 %vm85_vm2, %v4870_v31  ;;  %v1846_v34 = vpop.permute.xlu0 %1845 }
  0xc5   :  { %4875 = vmatpush1.msk.msra.mxu0 %vm89_vm1, %v1591_v33  ;;  %1751 = vmatprep.mubr.f32.mxu0 %v5076_v2  ;;  %v1851_v40 = vsel %vm1849_vm8, %v1844_v32, %v1846_v34 }
  0xc6   :  { %4877 = vmatprep.subr.msk.mxu0 %vm89_vm1, %v1594_v35  ;;  %v1848_v38 = vpop.permute.xlu1 %1847  ;;  %v2395_v35 = vrot.slane %v32_v61, %v2394_v28 }
  0xc7   :  { %v1855_v46 = vsel %vm1849_vm8, %v1848_v38, %v1838_v30  ;;  %v1850_v48 = vsel %vm1849_vm8, %v1846_v34, %v1848_v38  ;;  %v4560_v38 = vld [vmem:[%s5868_s5] sm:$0xff] }
  0xc8   :  { %4876 = vmatmul.mubr.msk.f32.vlgmr.msra.gmra.mrb[2].mxu0 %vm85_vm2, %v4870_v31  ;;  %v2101_v39 = vpop.permute.xlu0 %2100 }
  0xc9   :  { %4878 = vmatpush1.msk.msra.mxu0 %vm89_vm1, %v1589_v37  ;;  %1822 = vmatprep.mubr.f32.mxu0 %v5076_v2 }
  0xca   :  { %4881 = vmatprep.subr.msk.mxu0 %vm89_vm1, %v1853_v36  ;;  %v2103_v43 = vpop.permute.xlu1 %2102 }
  0xcb   :  { %v2114_v47 = vsel %vm2110_vm9, %v2101_v39, %v2103_v43 }
  0xcc   :  { %4879 = vmatmul.mubr.msk.f32.vlgmr.msra.gmra.mrb[4].mxu0 %vm85_vm2, %v4870_v31  ;;  %v2099_v44 = vpop.permute.xlu0 %2098  ;;  %v2399_v31 = vrot.slane %v32_v61, %v2398_v21 }
  0xcd   :  { %4882 = vmatpush1.msk.msra.mxu0 %vm89_vm1, %v1854_v41  ;;  %1941 = vmatprep.mubr.f32.mxu0 %v5076_v2  ;;  %v2115_v52 = vsel %vm2110_vm9, %v2099_v44, %v2101_v39  ;;  %v4573_v39 = vld [vmem:[%s5869_s7] sm:$0xff] }
  0xce   :  { %4884 = vmatprep.subr.msk.mxu0 %vm89_vm1, %v1851_v40  ;;  %v2105_v49 = vpop.permute.xlu1 %2104 }
  0xcf   :  { %v2113_v55 = vsel %vm2110_vm9, %v2103_v43, %v2105_v49 }
  0xd0   :  { %4883 = vmatmul.mubr.msk.f32.vlgmr.msra.gmra.mrb[0].mxu0 %vm85_vm2, %v4880_v42  ;;  %v2107_v50 = vpop.permute.xlu0 %2106 }
  0xd1   :  { %4885 = vmatpush1.msk.msra.mxu0 %vm89_vm1, %v1852_v45  ;;  %2012 = vmatprep.mubr.f32.mxu0 %v5076_v2  ;;  %v2112_v51 = vsel %vm2110_vm9, %v2105_v49, %v2107_v50 }
  0xd2   :  { %4887 = vmatprep.subr.msk.mxu0 %vm89_vm1, %v1855_v46  ;;  %v2109_v54 = vpop.permute.xlu1 %2108  ;;  %v5634_v46 = vld [vmem:[%s5870_s4 + $0x8] sm:$0xff] }
  0xd3   :  { %v2116_v56 = vsel %vm2110_vm9, %v2109_v54, %v2099_v44  ;;  %v2111_v57 = vsel %vm2110_vm9, %v2107_v50, %v2109_v54 }
  0xd4   :  { %4886 = vmatmul.mubr.msk.f32.vlgmr.msra.gmra.mrb[2].mxu0 %vm85_vm2, %v4880_v42 }
  0xd5   :  { %4888 = vmatpush1.msk.msra.mxu0 %vm89_vm1, %v1850_v48  ;;  %2083 = vmatprep.mubr.f32.mxu0 %v5076_v2 }
  0xd6   :  { %4891 = vmatprep.subr.msk.mxu0 %vm89_vm1, %v2114_v47 }
  0xd8   :  { %4889 = vmatmul.mubr.msk.f32.vlgmr.msra.gmra.mrb[4].mxu0 %vm85_vm2, %v4880_v42 }
  0xd9   :  { %4892 = vmatpush1.msk.msra.mxu0 %vm89_vm1, %v2115_v52  ;;  %2202 = vmatprep.mubr.f32.mxu0 %v5076_v2 }
  0xda   :  { %4894 = vmatprep.subr.msk.mxu0 %vm89_vm1, %v2112_v51 }
  0xdc   :  { %4893 = vmatmul.mubr.msk.f32.vlgmr.msra.gmra.mrb[0].mxu0 %vm85_vm2, %v4890_v53 }
  0xdd   :  { %4895 = vmatpush1.msk.msra.mxu0 %vm89_vm1, %v2113_v55  ;;  %2273 = vmatprep.mubr.f32.mxu0 %v5076_v2 }
  0xde   :  { %4897 = vmatprep.subr.msk.mxu0 %vm89_vm1, %v2116_v56  ;;  %v2412_v56 = vld [vmem:[%s5870_s4] sm:$0xff] }
  0xe0   :  { %4896 = vmatmul.mubr.msk.f32.vlgmr.msra.gmra.mrb[2].mxu0 %vm85_vm2, %v4890_v53 }
  0xe1   :  { %4898 = vmatpush1.msk.msra.mxu0 %vm89_vm1, %v2111_v57  ;;  %2344 = vmatprep.mubr.f32.mxu0 %v5076_v2  ;;  %v2361_v60 = vpop.permute.xlu0 %2360 }
  0xe4   :  { %4899 = vmatmul.mubr.msk.f32.vlgmr.msra.gmra.mrb[4].mxu0 %vm85_vm2, %v4890_v53 }
  0xe5   :  { %2519 = vmatprep.mubr.f32.mxu0 %v5076_v2 }
 0x1af   :  { %v2204_v63 = vpop.f32.mrb[0].mxu0 }
 0x1b0   :  { %v2363_v7 = vadd.f32 %v2361_v60, %v2204_v63  ;;  %v2206_v8 = vpop.f32.mrb[1].mxu0 }
 0x1b1   :  { %v2364_v13 = vadd.f32 %v2361_v60, %v2206_v8 }
 0x1b2   :  { %v2369_v14 = vmax.f32 %v2363_v7, 0.0 }
 0x1b3   :  { %v2370_v15 = vmax.f32 %v2364_v13, 0.0  ;;  %v2275_v5 = vpop.f32.mrb[2].mxu0 }
 0x1b4   :  { %v5511_v17 = vmul.f32 %v2379_v11, %v2369_v14  ;;  %v2365_v9 = vadd.f32 %v2361_v60, %v2275_v5  ;;  %v2277_v1 = vpop.f32.mrb[3].mxu0 }
 0x1b5   :  { %v5513_v19 = vmul.f32 %v2383_v0, %v2370_v15  ;;  %v2366_v20 = vadd.f32 %v2361_v60, %v2277_v1  ;;  %v4907_v0 = vld [vmem:[%s5870_s4 + $0x10] sm:$0xff] }
 0x1b6   :  { %v2371_v22 = vmax.f32 %v2365_v9, 0.0  ;;  %2413 = vrot.lane.b32.xlu1 %v5511_v17, %s5078_s12 }
 0x1b7   :  { %v2346_v24 = vpop.f32.mrb[4].mxu0  ;;  %2435 = vrot.lane.b32.xlu0 %v5513_v19, %s5077_s9  ;;  %v2372_v26 = vmax.f32 %v2366_v20, 0.0 }
 0x1b8   :  { %v5519_v25 = vmul.f32 %v2387_v18, %v2371_v22  ;;  %v2367_v27 = vadd.f32 %v2361_v60, %v2346_v24  ;;  %v2348_v29 = vpop.f32.mrb[5].mxu0 }
 0x1b9   :  { %v2368_v30 = vadd.f32 %v2361_v60, %v2348_v29  ;;  %v5523_v33 = vmul.f32 %v2391_v23, %v2372_v26  ;;  %v4911_v26 = vld [vmem:[%s5870_s4 + $0x18] sm:$0xff] }
 0x1ba   :  { %2437 = vrot.lane.b32.xlu1 %v5519_v25, %s5077_s9  ;;  %v2373_v34 = vmax.f32 %v2367_v27, 0.0 }
 0x1bb   :  { %v2374_v32 = vmax.f32 %v2368_v30, 0.0 }
 0x1bc   :  { %v5531_v37 = vmul.f32 %v2395_v35, %v2373_v34 }
 0x1bd   :  { %v5525_v36 = vmul.f32 %v2399_v31, %v2374_v32 }
 0x1be   :  { %2439 = vrot.lane.b32.xlu1 %v5523_v33, %s5077_s9 }
 0x1bf   :  { %2443 = vrot.lane.b32.xlu0 %v5525_v36, %s5077_s9 }
 0x1c2   :  { %2441 = vrot.lane.b32.xlu1 %v5531_v37, %s5077_s9 }
 0x1c3   :  { %2415 = vrot.lane.b32.xlu0 %v5513_v19, %s5078_s12 }
 0x1c6   :  { %2423 = vrot.lane.b32.xlu1 %v5525_v36, %s5078_s12 }
 0x1c7   :  { %2417 = vrot.lane.b32.xlu0 %v5519_v25, %s5078_s12 }
 0x1ca   :  { %2419 = vrot.lane.b32.xlu1 %v5523_v33, %s5078_s12 }
 0x1cb   :  { %2421 = vrot.lane.b32.xlu0 %v5531_v37, %s5078_s12 }
 0x1ce   :  { %2886 = vrot.lane.b32.xlu1 %v5511_v17, %s5079_s13 }
 0x1cf   :  { %2888 = vrot.lane.b32.xlu0 %v5513_v19, %s5079_s13 }
 0x1d2   :  { %2896 = vrot.lane.b32.xlu1 %v5525_v36, %s5079_s13 }
 0x1d3   :  { %2890 = vrot.lane.b32.xlu0 %v5519_v25, %s5079_s13 }
 0x1d6   :  { %2892 = vrot.lane.b32.xlu1 %v5523_v33, %s5079_s13 }
 0x1d7   :  { %2894 = vrot.lane.b32.xlu0 %v5531_v37, %s5079_s13 }
 0x1da   :  { %3128 = vrot.lane.b32.xlu1 %v5511_v17, %s5080_s14 }
 0x1db   :  { %3130 = vrot.lane.b32.xlu0 %v5513_v19, %s5080_s14 }
 0x1de   :  { %3138 = vrot.lane.b32.xlu1 %v5525_v36, %s5080_s14 }
 0x1df   :  { %3132 = vrot.lane.b32.xlu0 %v5519_v25, %s5080_s14 }
 0x1e2   :  { %3134 = vrot.lane.b32.xlu1 %v5523_v33, %s5080_s14 }
 0x1e3   :  { %3136 = vrot.lane.b32.xlu0 %v5531_v37, %s5080_s14 }
 0x1e6   :  { %3596 = vrot.lane.b32.xlu1 %v5513_v19, %s5081_s15 }
 0x1e7   :  { %3598 = vrot.lane.b32.xlu0 %v5519_v25, %s5081_s15 }
 0x1ea   :  { %3594 = vrot.lane.b32.xlu1 %v5511_v17, %s5081_s15 }
 0x1eb   :  { %3600 = vrot.lane.b32.xlu0 %v5523_v33, %s5081_s15 }
 0x1ee   :  { %3602 = vrot.lane.b32.xlu1 %v5531_v37, %s5081_s15 }
 0x1ef   :  { %3604 = vrot.lane.b32.xlu0 %v5525_v36, %s5081_s15 }
 0x1f2   :  { %3838 = vrot.lane.b32.xlu1 %v5513_v19, %s5082_s16 }
 0x1f3   :  { %3840 = vrot.lane.b32.xlu0 %v5519_v25, %s5082_s16 }
 0x1f6   :  { %3836 = vrot.lane.b32.xlu1 %v5511_v17, %s5082_s16 }
 0x1f7   :  { %3842 = vrot.lane.b32.xlu0 %v5523_v33, %s5082_s16 }
 0x1fa   :  { %3844 = vrot.lane.b32.xlu1 %v5531_v37, %s5082_s16 }
 0x1fb   :  { %3846 = vrot.lane.b32.xlu0 %v5525_v36, %s5082_s16 }
 0x1fe   :  { %4080 = vrot.lane.b32.xlu1 %v5513_v19, %s5083_s17 }
 0x1ff   :  { %4082 = vrot.lane.b32.xlu0 %v5519_v25, %s5083_s17 }
 0x202   :  { %4078 = vrot.lane.b32.xlu1 %v5511_v17, %s5083_s17 }
 0x203   :  { %4084 = vrot.lane.b32.xlu0 %v5523_v33, %s5083_s17 }
 0x206   :  { %4086 = vrot.lane.b32.xlu1 %v5531_v37, %s5083_s17 }
 0x207   :  { %4088 = vrot.lane.b32.xlu0 %v5525_v36, %s5083_s17 }
 0x20a   :  { %4322 = vrot.lane.b32.xlu1 %v5513_v19, %s5084_s18 }
 0x20b   :  { %4324 = vrot.lane.b32.xlu0 %v5519_v25, %s5084_s18 }
 0x20e   :  { %4320 = vrot.lane.b32.xlu1 %v5511_v17, %s5084_s18 }
 0x20f   :  { %4326 = vrot.lane.b32.xlu0 %v5523_v33, %s5084_s18 }
 0x212   :  { %4328 = vrot.lane.b32.xlu1 %v5531_v37, %s5084_s18 }
 0x213   :  { %4330 = vrot.lane.b32.xlu0 %v5525_v36, %s5084_s18 }
 0x216   :  { %2433 = vrot.lane.b32.xlu1 %v5511_v17, %s5077_s9 }
 0x217   :  { %4563 = vperm.xlu0 %5068, %v4560_v38  }
 0x21a   :  { %4576 = vperm.xlu1 %5069, %v4573_v39  }
 0x228   :  { %v2414_v40 = vpop.permute.xlu1 %2413 }
 0x229   :  { %v5625_v42 = vpop.permute.xlu0 %2435 }
 0x22c   :  { %v2438_v41 = vpop.permute.xlu1 %2437 }
 0x22d   :  { %v2448_v47 = vsel %vm78_vm0, %v5625_v42, %v2438_v41 }
 0x230   :  { %v2440_v43 = vpop.permute.xlu1 %2439 }
 0x231   :  { %v5627_v44 = vpop.permute.xlu0 %2443  ;;  %v2447_v45 = vsel %vm78_vm0, %v2438_v41, %v2440_v43 }
 0x232   :  { %2526 = vmatprep.subr.mxu1 %v2447_v45 }
 0x233   :  { %2527 = vmatpush1.msra.mxu1 %v2448_v47 }
 0x234   :  { %4902 = vmatmul.mubr.msk.f32.vlgmr.msra.gmra.mrb[0].mxu1 %vm2451_vm10, %v5634_v46  ;;  %v2442_v48 = vpop.permute.xlu1 %2441 }
 0x235   :  { %v2446_v49 = vsel %vm78_vm0, %v2440_v43, %v2442_v48  ;;  %v2416_v50 = vpop.permute.xlu0 %2415  ;;  %v2445_v51 = vsel %vm78_vm0, %v2442_v48, %v5627_v44  ;;  %2661 = vmatprep.mubr.f32.mxu1 %v5076_v2 }
 0x236   :  { %2597 = vmatprep.subr.mxu1 %v2445_v51  ;;  %v2429_v52 = vsel %vm57_vm3, %v2414_v40, %v2416_v50 }
 0x237   :  { %2598 = vmatpush1.msra.mxu1 %v2446_v49 }
 0x238   :  { %4903 = vmatmul.mubr.msk.f32.vlgmr.msra.gmra.mrb[2].mxu1 %vm2451_vm10, %v5634_v46  ;;  %2671 = vmatprep.subr.mxu1 %v2429_v52  ;;  %v2424_v53 = vpop.permute.xlu1 %2423 }
 0x239   :  { %v2430_v54 = vsel %vm57_vm3, %v2424_v53, %v2414_v40  ;;  %v2418_v55 = vpop.permute.xlu0 %2417  ;;  %2735 = vmatprep.mubr.f32.mxu1 %v5076_v2  ;;  %v4915_v40 = vld [vmem:[%s5870_s4 + $0x20] sm:$0xff] }
 0x23a   :  { %2672 = vmatpush1.msra.mxu1 %v2430_v54  ;;  %v2428_v60 = vsel %vm57_vm3, %v2416_v50, %v2418_v55 }
 0x23c   :  { %4904 = vmatmul.mubr.msk.f32.vlgmr.msra.gmra.mrb[4].mxu1 %vm2451_vm10, %v2412_v56  ;;  %v2420_v57 = vpop.permute.xlu1 %2419 }
 0x23d   :  { %v2422_v58 = vpop.permute.xlu0 %2421  ;;  %v2427_v59 = vsel %vm57_vm3, %v2418_v55, %v2420_v57  ;;  %2806 = vmatprep.mubr.f32.mxu1 %v5076_v2 }
 0x23e   :  { %2742 = vmatprep.subr.mxu1 %v2427_v59  ;;  %v2425_v61 = vsel %vm57_vm3, %v2422_v58, %v2424_v53  ;;  %v2426_v62 = vsel %vm57_vm3, %v2420_v57, %v2422_v58  ;;  %v4923_v59 = vld [vmem:[%s5870_s4 + $0x30] sm:$0xff] }
 0x23f   :  { %2743 = vmatpush1.msra.mxu1 %v2428_v60 }
 0x240   :  { %4905 = vmatmul.mubr.msk.f32.vlgmr.msra.gmra.mrb[0].mxu1 %vm2451_vm10, %v2412_v56  ;;  %2813 = vmatprep.subr.mxu1 %v2425_v61  ;;  %v2887_v63 = vpop.permute.xlu1 %2886 }
 0x241   :  { %v2889_v7 = vpop.permute.xlu0 %2888  ;;  %2814 = vmatpush1.msra.mxu1 %v2426_v62  ;;  %2877 = vmatprep.mubr.f32.mxu1 %v5076_v2 }
 0x242   :  { %v2902_v8 = vsel %vm569_vm4, %v2887_v63, %v2889_v7 }
 0x243   :  { %2907 = vmatprep.subr.mxu1 %v2902_v8 }
 0x244   :  { %4906 = vmatmul.mubr.msk.f32.vlgmr.msra.gmra.mrb[2].mxu1 %vm2451_vm10, %v2412_v56  ;;  %v2897_v11 = vpop.permute.xlu1 %2896 }
 0x245   :  { %v2903_v12 = vsel %vm569_vm4, %v2897_v11, %v2887_v63  ;;  %v2891_v13 = vpop.permute.xlu0 %2890  ;;  %2971 = vmatprep.mubr.f32.mxu1 %v5076_v2 }
 0x246   :  { %2908 = vmatpush1.msra.mxu1 %v2903_v12  ;;  %v2901_v16 = vsel %vm569_vm4, %v2889_v7, %v2891_v13 }
 0x248   :  { %4908 = vmatmul.mubr.msk.f32.vlgmr.msra.gmra.mrb[4].mxu1 %vm2451_vm10, %v4907_v0  ;;  %v2893_v14 = vpop.permute.xlu1 %2892 }
 0x249   :  { %v2895_v15 = vpop.permute.xlu0 %2894  ;;  %v2900_v5 = vsel %vm569_vm4, %v2891_v13, %v2893_v14  ;;  %3042 = vmatprep.mubr.f32.mxu1 %v5076_v2 }
 0x24a   :  { %2978 = vmatprep.subr.mxu1 %v2900_v5  ;;  %v2898_v9 = vsel %vm569_vm4, %v2895_v15, %v2897_v11  ;;  %v2899_v18 = vsel %vm569_vm4, %v2893_v14, %v2895_v15  ;;  %v4927_v15 = vld [vmem:[%s5870_s4 + $0x38] sm:$0xff] }
 0x24b   :  { %2979 = vmatpush1.msra.mxu1 %v2901_v16 }
 0x24c   :  { %4909 = vmatmul.mubr.msk.f32.vlgmr.msra.gmra.mrb[0].mxu1 %vm2451_vm10, %v4907_v0  ;;  %3049 = vmatprep.subr.mxu1 %v2898_v9  ;;  %v3129_v1 = vpop.permute.xlu1 %3128 }
 0x24d   :  { %v3131_v20 = vpop.permute.xlu0 %3130  ;;  %3050 = vmatpush1.msra.mxu1 %v2899_v18  ;;  %3113 = vmatprep.mubr.f32.mxu1 %v5076_v2 }
 0x24e   :  { %v3144_v21 = vsel %vm830_vm5, %v3129_v1, %v3131_v20 }
 0x24f   :  { %3149 = vmatprep.subr.mxu1 %v3144_v21 }
 0x250   :  { %4910 = vmatmul.mubr.msk.f32.vlgmr.msra.gmra.mrb[2].mxu1 %vm2451_vm10, %v4907_v0  ;;  %v3139_v22 = vpop.permute.xlu1 %3138 }
 0x251   :  { %v3145_v23 = vsel %vm830_vm5, %v3139_v22, %v3129_v1  ;;  %v3133_v24 = vpop.permute.xlu0 %3132  ;;  %3213 = vmatprep.mubr.f32.mxu1 %v5076_v2 }
 0x252   :  { %3150 = vmatpush1.msra.mxu1 %v3145_v23  ;;  %v3143_v30 = vsel %vm830_vm5, %v3131_v20, %v3133_v24 }
 0x254   :  { %4912 = vmatmul.mubr.msk.f32.vlgmr.msra.gmra.mrb[4].mxu1 %vm2451_vm10, %v4911_v26  ;;  %v3135_v27 = vpop.permute.xlu1 %3134 }
 0x255   :  { %v3137_v28 = vpop.permute.xlu0 %3136  ;;  %v3142_v29 = vsel %vm830_vm5, %v3133_v24, %v3135_v27  ;;  %3284 = vmatprep.mubr.f32.mxu1 %v5076_v2 }
 0x256   :  { %3220 = vmatprep.subr.mxu1 %v3142_v29  ;;  %v3140_v31 = vsel %vm830_vm5, %v3137_v28, %v3139_v22  ;;  %v3141_v32 = vsel %vm830_vm5, %v3135_v27, %v3137_v28 }
 0x257   :  { %3221 = vmatpush1.msra.mxu1 %v3143_v30  ;;  %v5073_v30 = vld [vmem:[%s5864_s0] sm:$0xff] }
 0x258   :  { %4913 = vmatmul.mubr.msk.f32.vlgmr.msra.gmra.mrb[0].mxu1 %vm2451_vm10, %v4911_v26  ;;  %3291 = vmatprep.subr.mxu1 %v3140_v31  ;;  %v3597_v34 = vpop.permute.xlu1 %3596  ;;  %v5075_v31 = vld [vmem:[%s5864_s0 + $0x10] sm:$0xff] }
 0x259   :  { %v3599_v35 = vpop.permute.xlu0 %3598  ;;  %3292 = vmatpush1.msra.mxu1 %v3141_v32  ;;  %3355 = vmatprep.mubr.f32.mxu1 %v5076_v2 }
 0x25a   :  { %3373 = vmatprep.subr.mxu1 %v5513_v19  ;;  %v3609_v45 = vsel %vm1327_vm6, %v3597_v34, %v3599_v35 }
 0x25c   :  { %4914 = vmatmul.mubr.msk.f32.vlgmr.msra.gmra.mrb[2].mxu1 %vm2451_vm10, %v4911_v26  ;;  %v3595_v38 = vpop.permute.xlu1 %3594 }
 0x25d   :  { %3374 = vmatpush1.msra.mxu1 %v5511_v17  ;;  %v3601_v39 = vpop.permute.xlu0 %3600  ;;  %3437 = vmatprep.mubr.f32.mxu1 %v5076_v2 }
 0x25e   :  { %3444 = vmatprep.subr.mxu1 %v5523_v33  ;;  %v3608_v48 = vsel %vm1327_vm6, %v3599_v35, %v3601_v39 }
 0x260   :  { %4916 = vmatmul.mubr.msk.f32.vlgmr.msra.gmra.mrb[4].mxu1 %vm2451_vm10, %v4915_v40  ;;  %v3603_v41 = vpop.permute.xlu1 %3602 }
 0x261   :  { %3445 = vmatpush1.msra.mxu1 %v5519_v25  ;;  %v3605_v19 = vpop.permute.xlu0 %3604  ;;  %3508 = vmatprep.mubr.f32.mxu1 %v5076_v2  ;;  %v3610_v25 = vsel %vm1327_vm6, %v3595_v38, %v3597_v34  ;;  %v3607_v47 = vsel %vm1327_vm6, %v3601_v39, %v3603_v41 }
 0x262   :  { %3515 = vmatprep.subr.mxu1 %v5525_v36  ;;  %v3611_v51 = vsel %vm1327_vm6, %v3605_v19, %v3595_v38  ;;  %v3606_v52 = vsel %vm1327_vm6, %v3603_v41, %v3605_v19 }
 0x264   :  { %4917 = vmatmul.mubr.msk.f32.vlgmr.msra.gmra.mrb[0].mxu1 %vm2451_vm10, %v4915_v40  ;;  %v3839_v17 = vpop.permute.xlu1 %3838 }
 0x265   :  { %3516 = vmatpush1.msra.mxu1 %v5531_v37  ;;  %v3841_v43 = vpop.permute.xlu0 %3840  ;;  %3579 = vmatprep.mubr.f32.mxu1 %v5076_v2  ;;  %v4919_v37 = vld [vmem:[%s5870_s4 + $0x28] sm:$0xff] }
 0x266   :  { %3615 = vmatprep.subr.mxu1 %v3609_v45  ;;  %v3851_v55 = vsel %vm1588_vm7, %v3839_v17, %v3841_v43 }
 0x268   :  { %4918 = vmatmul.mubr.msk.f32.vlgmr.msra.gmra.mrb[2].mxu1 %vm2451_vm10, %v4915_v40  ;;  %v3837_v33 = vpop.permute.xlu1 %3836 }
 0x269   :  { %3616 = vmatpush1.msra.mxu1 %v3610_v25  ;;  %v3843_v36 = vpop.permute.xlu0 %3842  ;;  %3679 = vmatprep.mubr.f32.mxu1 %v5076_v2  ;;  %v3852_v56 = vsel %vm1588_vm7, %v3837_v33, %v3839_v17 }
 0x26a   :  { %3686 = vmatprep.subr.mxu1 %v3607_v47  ;;  %v3850_v61 = vsel %vm1588_vm7, %v3841_v43, %v3843_v36 }
 0x26c   :  { %4920 = vmatmul.mubr.msk.f32.vlgmr.msra.gmra.mrb[4].mxu1 %vm2451_vm10, %v4919_v37  ;;  %v3845_v49 = vpop.permute.xlu1 %3844 }
 0x26d   :  { %3687 = vmatpush1.msra.mxu1 %v3608_v48  ;;  %v3847_v50 = vpop.permute.xlu0 %3846  ;;  %3750 = vmatprep.mubr.f32.mxu1 %v5076_v2  ;;  %v3849_v58 = vsel %vm1588_vm7, %v3843_v36, %v3845_v49 }
 0x26e   :  { %3757 = vmatprep.subr.mxu1 %v3611_v51  ;;  %v3853_v63 = vsel %vm1588_vm7, %v3847_v50, %v3837_v33  ;;  %v3848_v7 = vsel %vm1588_vm7, %v3845_v49, %v3847_v50 }
 0x270   :  { %4921 = vmatmul.mubr.msk.f32.vlgmr.msra.gmra.mrb[0].mxu1 %vm2451_vm10, %v4919_v37  ;;  %v4081_v53 = vpop.permute.xlu1 %4080 }
 0x271   :  { %3758 = vmatpush1.msra.mxu1 %v3606_v52  ;;  %v4083_v54 = vpop.permute.xlu0 %4082  ;;  %3821 = vmatprep.mubr.f32.mxu1 %v5076_v2 }
 0x272   :  { %3857 = vmatprep.subr.mxu1 %v3851_v55  ;;  %v4093_v12 = vsel %vm1849_vm8, %v4081_v53, %v4083_v54 }
 0x274   :  { %4922 = vmatmul.mubr.msk.f32.vlgmr.msra.gmra.mrb[2].mxu1 %vm2451_vm10, %v4919_v37  ;;  %v4079_v57 = vpop.permute.xlu1 %4078 }
 0x275   :  { %3858 = vmatpush1.msra.mxu1 %v3852_v56  ;;  %3921 = vmatprep.mubr.f32.mxu1 %v5076_v2  ;;  %v4085_v60 = vpop.permute.xlu0 %4084  ;;  %v4094_v13 = vsel %vm1849_vm8, %v4079_v57, %v4081_v53 }
 0x276   :  { %3928 = vmatprep.subr.mxu1 %v3849_v58  ;;  %v4092_v16 = vsel %vm1849_vm8, %v4083_v54, %v4085_v60 }
 0x278   :  { %4924 = vmatmul.mubr.msk.f32.vlgmr.msra.gmra.mrb[4].mxu1 %vm2451_vm10, %v4923_v59  ;;  %v4087_v62 = vpop.permute.xlu1 %4086 }
 0x279   :  { %3929 = vmatpush1.msra.mxu1 %v3850_v61  ;;  %3992 = vmatprep.mubr.f32.mxu1 %v5076_v2  ;;  %v4089_v8 = vpop.permute.xlu0 %4088  ;;  %v4091_v14 = vsel %vm1849_vm8, %v4085_v60, %v4087_v62 }
 0x27a   :  { %3999 = vmatprep.subr.mxu1 %v3853_v63  ;;  %v4095_v18 = vsel %vm1849_vm8, %v4089_v8, %v4079_v57  ;;  %v4090_v1 = vsel %vm1849_vm8, %v4087_v62, %v4089_v8 }
 0x27c   :  { %4925 = vmatmul.mubr.msk.f32.vlgmr.msra.gmra.mrb[0].mxu1 %vm2451_vm10, %v4923_v59  ;;  %v4323_v11 = vpop.permute.xlu1 %4322 }
 0x27d   :  { %4000 = vmatpush1.msra.mxu1 %v3848_v7  ;;  %4063 = vmatprep.mubr.f32.mxu1 %v5076_v2  ;;  %v4325_v5 = vpop.permute.xlu0 %4324 }
 0x27e   :  { %4099 = vmatprep.subr.mxu1 %v4093_v12  ;;  %v4335_v23 = vsel %vm2110_vm9, %v4323_v11, %v4325_v5 }
 0x280   :  { %4926 = vmatmul.mubr.msk.f32.vlgmr.msra.gmra.mrb[2].mxu1 %vm2451_vm10, %v4923_v59  ;;  %v4321_v0 = vpop.permute.xlu1 %4320 }
 0x281   :  { %4100 = vmatpush1.msra.mxu1 %v4094_v13  ;;  %4163 = vmatprep.mubr.f32.mxu1 %v5076_v2  ;;  %v4327_v20 = vpop.permute.xlu0 %4326  ;;  %v4336_v26 = vsel %vm2110_vm9, %v4321_v0, %v4323_v11 }
 0x282   :  { %4170 = vmatprep.subr.mxu1 %v4091_v14  ;;  %v4334_v28 = vsel %vm2110_vm9, %v4325_v5, %v4327_v20 }
 0x284   :  { %4928 = vmatmul.mubr.msk.f32.vlgmr.msra.gmra.mrb[4].mxu1 %vm2451_vm10, %v4927_v15  ;;  %v4329_v9 = vpop.permute.xlu1 %4328 }
 0x285   :  { %4171 = vmatpush1.msra.mxu1 %v4092_v16  ;;  %4234 = vmatprep.mubr.f32.mxu1 %v5076_v2  ;;  %v4331_v27 = vpop.permute.xlu0 %4330 }
 0x286   :  { %4241 = vmatprep.subr.mxu1 %v4095_v18  ;;  %v4332_v29 = vsel %vm2110_vm9, %v4329_v9, %v4331_v27 }
 0x288   :  { %4929 = vmatmul.mubr.msk.f32.vlgmr.msra.gmra.mrb[0].mxu1 %vm2451_vm10, %v4927_v15  ;;  %v2434_v21 = vpop.permute.xlu1 %2433 }
 0x289   :  { %4242 = vmatpush1.msra.mxu1 %v4090_v1  ;;  %v2450_v22 = vsel %vm78_vm0, %v5627_v44, %v2434_v21  ;;  %v2449_v24 = vsel %vm78_vm0, %v2434_v21, %v5625_v42  ;;  %4305 = vmatprep.mubr.f32.mxu1 %v5076_v2  ;;  %v4333_v44 = vsel %vm2110_vm9, %v4327_v20, %v4329_v9  ;;  %v4931_v42 = vld [vmem:[%s5870_s4 + $0x40] sm:$0xff] }
 0x28a   :  { %4341 = vmatprep.subr.mxu1 %v4335_v23  ;;  %2455 = vmatprep.subr.mxu0 %v2449_v24 }
 0x28b   :  { %2456 = vmatpush1.msra.mxu0 %v2450_v22 }
 0x28c   :  { %4901 = vmatmul.mubr.msk.f32.vlgmr.msra.gmra.mrb[6].mxu0 %vm2451_vm10, %v5634_v46  ;;  %4930 = vmatmul.mubr.msk.f32.vlgmr.msra.gmra.mrb[2].mxu1 %vm2451_vm10, %v4927_v15  ;;  %v4337_v46 = vsel %vm2110_vm9, %v4331_v27, %v4321_v0 }
 0x28d   :  { %4342 = vmatpush1.msra.mxu1 %v4336_v26  ;;  %4405 = vmatprep.mubr.f32.mxu1 %v5076_v2 }
 0x28e   :  { %4412 = vmatprep.subr.mxu1 %v4333_v44 }
 0x290   :  { %4932 = vmatmul.mubr.msk.f32.vlgmr.msra.gmra.mrb[4].mxu1 %vm2451_vm10, %v4931_v42 }
 0x291   :  { %4413 = vmatpush1.msra.mxu1 %v4334_v28  ;;  %4476 = vmatprep.mubr.f32.mxu1 %v5076_v2 }
 0x292   :  { %4483 = vmatprep.subr.mxu1 %v4337_v46 }
 0x294   :  { %4933 = vmatmul.mubr.msk.f32.vlgmr.msra.gmra.mrb[0].mxu1 %vm2451_vm10, %v4931_v42 }
 0x295   :  { %4484 = vmatpush1.msra.mxu1 %v4332_v29  ;;  %4547 = vmatprep.mubr.f32.mxu1 %v5076_v2 }
 0x296   :  { %4935 = vmatprep.subr.msk.mxu1 %vm89_vm1, %v5151_v4  ;;  %v5074_v4 = vld [vmem:[%s5864_s0 + $0x8] sm:$0xff]  ;;  %v4564_v34 = vpop.permute.xlu0 %4563 }
 0x298   :  { %4934 = vmatmul.mubr.msk.f32.vlgmr.msra.gmra.mrb[2].mxu1 %vm2451_vm10, %v4931_v42 }
 0x299   :  { %4936 = vmatpush1.msk.msra.mxu1 %vm89_vm1, %v5073_v30  ;;  %4646 = vmatprep.mubr.f32.mxu1 %v5076_v2  ;;  %v4577_v39 = vpop.permute.xlu1 %4576 }
 0x29a   :  { %4938 = vmatprep.subr.msk.mxu1 %vm89_vm1, %v5164_v6  ;;  %v4950_v45 = vadd.f32 %v4577_v39, %v4564_v34 }
 0x29c   :  { %4937 = vmatmul.mubr.msk.f32.vlgmr.msra.gmra.mrb[4].mxu1 %vm85_vm2, %v4572_v10 }
 0x29d   :  { %4939 = vmatpush1.msk.msra.mxu1 %vm89_vm1, %v5074_v4  ;;  %4717 = vmatprep.mubr.f32.mxu1 %v5076_v2 }
 0x29e   :  { %4941 = vmatprep.subr.msk.mxu1 %vm89_vm1, %v5147_v3 }
 0x2a0   :  { %4940 = vmatmul.mubr.msk.f32.vlgmr.msra.gmra.mrb[0].mxu1 %vm85_vm2, %v4572_v10 }
 0x2a1   :  { %4942 = vmatpush1.msk.msra.mxu1 %vm89_vm1, %v5075_v31  ;;  %4788 = vmatprep.mubr.f32.mxu1 %v5076_v2 }
 0x2a4   :  { %4943 = vmatmul.mubr.msk.f32.vlgmr.msra.gmra.mrb[2].mxu1 %vm85_vm2, %v4572_v10 }
 0x35f   :  { %v2521_v6 = vpop.f32.mrb[6].mxu0 }
 0x360   :  { %v2523_v32 = vpop.f32.mrb[7].mxu0  ;;  %v4944_v35 = vadd.f32 %v4564_v34, %v2521_v6 }
 0x361   :  { %v4947_v38 = vadd.f32 %v4564_v34, %v2523_v32 }
 0x362   :  { %v4945_v40 = vadd.f32 %v4944_v35, %v4577_v39 }
 0x363   :  { %v4948_v41 = vadd.f32 %v4947_v38, %v4577_v39 }
 0x36f   :  { %v4648_v3 = vpop.f32.mrb[4].mxu1 }
 0x370   :  { %v4946_v19 = vadd.f32 %v4945_v40, %v4648_v3  ;;  %v4650_v17 = vpop.f32.mrb[5].mxu1 }
 0x371   :  { %v4949_v43 = vadd.f32 %v4948_v41, %v4650_v17 }
 0x372   :  { %4801 = vst [vmem:[%s5872_s8] sm:$0xff] %v4946_v19 }
 0x373   :  { %4802 = vst [vmem:[%s5872_s8 + $0x8] sm:$0xff] %v4949_v43  ;;  %v4719_v2 = vpop.f32.mrb[0].mxu1 }
 0x374   :  { %v4951_v25 = vadd.f32 %v4950_v45, %v4719_v2  ;;  %v4721_v33 = vpop.f32.mrb[1].mxu1 }
 0x375   :  { %v4953_v36 = vadd.f32 %v4950_v45, %v4721_v33 }
 0x376   :  { %4803 = vst [vmem:[%s5872_s8 + $0x10] sm:$0xff] %v4951_v25 }
 0x377   :  { %4804 = vst [vmem:[%s5872_s8 + $0x18] sm:$0xff] %v4953_v36  ;;  %v4790_v47 = vpop.f32.mrb[2].mxu1 }
 0x378   :  { %v4955_v37 = vadd.f32 %v4950_v45, %v4790_v47  ;;  %v4792_v48 = vpop.f32.mrb[3].mxu1 }
 0x379   :  { %v4957_v49 = vadd.f32 %v4950_v45, %v4792_v48 }
 0x37a   :  { %4805 = vst [vmem:[%s5872_s8 + $0x20] sm:$0xff] %v4955_v37 }
 0x37b   :  { %4806 = vst [vmem:[%s5872_s8 + $0x28] sm:$0xff] %v4957_v49 }

</bundles_post_ra>
